<compile_context>
chip_gen: v7x
topology: tpu7x:2x2x1
jax: 0.10.0
libtpu: 0.0.40
codegen_flags: <defaults>
</compile_context>

<pallas_src>
import functools
import random

import jax
import jax.numpy as jnp
from jax.experimental import pallas as pl
from jax.experimental.pallas import tpu as pltpu

# ----------------------------- hyperparameters -----------------------------
TEMP = 2.0
ALPHA = 0.4
W_SYNC = 1.0
W_RECON = 1.0
W_CROSS = 2.0
NUM_BLOCKS = 2          # == num_feat
NUM_FEAT = NUM_BLOCKS

# ------------------------------- dimensions --------------------------------
H_S = 32                # student hidden width  -> lanes [0, 32)
H_T = 64                # teacher hidden width  -> lanes [32, 96)
NUM_CLASSES = 10        # student class logits  -> lanes [0, 10)
T_LOGIT_OFF = 64        # teacher class logits  -> lanes [64, 74)
LANES = 128             # lane-dense slab width (vreg / MXU friendly)
NEG = -1e30             # finite softmax mask value (avoids inf-inf NaNs)


# --------------------------- the fused Pallas kernel ------------------------
def _distiller_kernel(x_ref, labels_ref, w0_ref, w1_ref, wh_ref, ed_ref,
                      bias_ref, logits_ref, losses_ref, *,
                      from_teachers, batch, tile_m):
    f32, bf16 = jnp.float32, jnp.bfloat16

    lane = jax.lax.broadcasted_iota(jnp.int32, (1, LANES), 1)
    local_row = jax.lax.broadcasted_iota(jnp.int32, (tile_m, 1), 0)
    global_row = local_row + pl.program_id(0) * tile_m
    row_mask = (global_row < batch).astype(f32)                 # valid batch rows

    s_mask = (lane < H_S).astype(f32)                           # student slot
    t_mask = ((lane >= H_S) & (lane < H_S + H_T)).astype(f32)   # teacher slot
    cls_mask = lane < NUM_CLASSES                               # valid classes

    # Packed weights (bf16 for the MXU) and the single (8,128) bias slab (f32).
    w0, w1, wh = w0_ref[...], w1_ref[...], wh_ref[...]
    ed0, ed1 = ed_ref[0], ed_ref[1]
    biases = bias_ref[...]
    b0 = biases[0:1, :]
    b1 = biases[1:2, :]
    bh = biases[2:3, :]
    bed0 = biases[3:4, :]
    bed1 = biases[4:5, :]

    def mm(a, w):  # bf16 MXU matmul, f32 accumulation
        return jnp.dot(a.astype(bf16), w, preferred_element_type=f32)

    def fd_col(fa, fb, slot_mask, dim):
        # per-row (TM,1) column of: MSE-contrib (sum(diff^2)/dim) + (1 - cos).
        fa = fa * slot_mask
        fb = fb * slot_mask
        diff = fa - fb
        mse = jnp.sum(diff * diff, axis=-1, keepdims=True) * (1.0 / dim)
        dot = jnp.sum(fa * fb, axis=-1, keepdims=True)
        na = jnp.sqrt(jnp.sum(fa * fa, axis=-1, keepdims=True))
        nb = jnp.sqrt(jnp.sum(fb * fb, axis=-1, keepdims=True))
        cos = dot / jnp.maximum(na * nb, 1e-8)
        return mse + (1.0 - cos)

    def kl_col(student_logits, teacher_logits):
        # per-row (TM,1) column of T^2 * KL(softmax(t/T) || softmax(s/T)).
        inv_t = 1.0 / TEMP
        s = jnp.where(cls_mask, student_logits * inv_t, NEG)
        t = jnp.where(cls_mask, teacher_logits * inv_t, NEG)
        ms = jnp.max(s, axis=-1, keepdims=True)
        log_ps = (s - ms) - jnp.log(jnp.sum(jnp.exp(s - ms), axis=-1, keepdims=True))
        mt = jnp.max(t, axis=-1, keepdims=True)
        log_pt = (t - mt) - jnp.log(jnp.sum(jnp.exp(t - mt), axis=-1, keepdims=True))
        pt = jnp.exp(log_pt)
        per = jnp.where(cls_mask, pt * (log_pt - log_ps), 0.0)
        return jnp.sum(per, axis=-1, keepdims=True) * (TEMP * TEMP)

    ft0, ft1 = from_teachers  # static python bools -> routing resolved at trace

    # ---------------- fused student + teacher block 0 ----------------
    # h1[:, 0:32] = student features, h1[:, 32:96] = teacher features.
    h1 = jnp.maximum(mm(x_ref[...], w0) + b0, 0.0)

    # block-0 fused adapter: g0[:,0:32] = enc0(feat_t), g0[:,32:96] = dec0(feat_s);
    # g0r[:,0:32] = enc0(dec0(feat_s)), g0r[:,32:96] = dec0(enc0(feat_t)).
    g0 = mm(h1, ed0) + bed0
    g0r = mm(g0, ed0) + bed0
    sync_col = fd_col(h1, g0, s_mask, H_S) + fd_col(h1, g0, t_mask, H_T)
    recon_col = fd_col(h1, g0r, t_mask, H_T) + fd_col(h1, g0r, s_mask, H_S)

    # SwapNet cross path, block 0 (reuses block-0 activations / adapter outputs;
    # forward-identical to re-running the routed blocks).
    state = (g0 if ft0 else h1) * s_mask

    # ---------------- fused student + teacher block 1 ----------------
    h2 = jnp.maximum(mm(h1, w1) + b1, 0.0)

    g1 = mm(h2, ed1) + bed1
    g1r = mm(g1, ed1) + bed1
    sync_col = sync_col + fd_col(h2, g1, s_mask, H_S) + fd_col(h2, g1, t_mask, H_T)
    recon_col = recon_col + fd_col(h2, g1r, t_mask, H_T) + fd_col(h2, g1r, s_mask, H_S)

    # SwapNet cross path, block 1.
    if ft1:
        # decoder0(state) already exists in the block-0 adapter outputs:
        #   ft0=True  -> dec0(enc0(feat_t)) = g0r teacher lanes
        #   ft0=False -> dec0(feat_s)       = g0  teacher lanes
        t_in = (g0r if ft0 else g0) * t_mask
        t2 = jnp.maximum(mm(t_in, w1) + b1 * t_mask, 0.0)      # teacher block 1
        state = (mm(t2, ed1) + bed1) * s_mask                  # encoder1
    else:
        state = jnp.maximum(mm(state, w1) + b1 * s_mask, 0.0)  # student block 1

    # ---------------- fused classifier heads ----------------
    # student logits at lanes [0,10), teacher logits at lanes [64,74).
    logits_both = mm(h2, wh) + bh
    logits_t = pltpu.roll(logits_both, shift=(LANES - T_LOGIT_OFF) % LANES, axis=1)
    logits_cross = mm(state, wh) + bh        # only student lanes are meaningful

    # ---------------- per-row loss columns ----------------
    onehot = (lane == labels_ref[...]).astype(f32)             # labels < NUM_CLASSES
    ls = jnp.where(cls_mask, logits_both, NEG)
    m = jnp.max(ls, axis=-1, keepdims=True)
    lse = jnp.log(jnp.sum(jnp.exp(ls - m), axis=-1, keepdims=True)) + m
    picked = jnp.sum(onehot * logits_both, axis=-1, keepdims=True)
    hard_col = ALPHA * (lse - picked)

    soft_col = (1.0 - ALPHA) * kl_col(logits_both, logits_t)
    cross_col = W_CROSS * kl_col(logits_cross, logits_t)
    sync_col = (W_SYNC / max(NUM_FEAT, 1)) * sync_col
    recon_col = (W_RECON / max(NUM_FEAT, 1)) * recon_col

    # ---------------- one fused cross-sublane reduction ----------------
    def lane_is(i):
        return (lane == i).astype(f32)

    partial = (hard_col * lane_is(0) + soft_col * lane_is(1)
               + sync_col * lane_is(2) + recon_col * lane_is(3)
               + cross_col * lane_is(4))
    reduced = jnp.sum(partial * row_mask, axis=0, keepdims=True)   # (1, 128)

    logits_ref[...] = logits_both
    losses_ref[...] = jnp.broadcast_to(reduced[:, None, :], (1, 8, LANES))


# --------------------------- synthetic SwapNet -------------------------------
def init_swapnet_params(key, d_in, h_s, h_t, num_classes):
    def dense(k, fan_in, fan_out):
        w = jax.random.normal(k, (fan_in, fan_out), jnp.float32) * 0.02
        b = jnp.zeros((fan_out,), jnp.float32)
        return w, b

    ks = jax.random.split(key, 10)
    p = {}
    # student (2 blocks + head), hidden h_s
    p["s_w0"], p["s_b0"] = dense(ks[0], d_in, h_s)
    p["s_w1"], p["s_b1"] = dense(ks[1], h_s, h_s)
    p["s_hw"], p["s_hb"] = dense(ks[2], h_s, num_classes)
    # teacher (2 blocks + head), hidden h_t
    p["t_w0"], p["t_b0"] = dense(ks[3], d_in, h_t)
    p["t_w1"], p["t_b1"] = dense(ks[4], h_t, h_t)
    p["t_hw"], p["t_hb"] = dense(ks[5], h_t, num_classes)
    # per-block encoders (teacher -> student space) / decoders (student -> teacher)
    p["e_w0"], p["e_b0"] = dense(ks[6], h_t, h_s)
    p["e_w1"], p["e_b1"] = dense(ks[7], h_t, h_s)
    p["d_w0"], p["d_b0"] = dense(ks[8], h_s, h_t)
    p["d_w1"], p["d_b1"] = dense(ks[9], h_s, h_t)
    return p


def pack_swapnet_params(p):
    """Pack the small SwapNet weights into fused lane-dense 128-wide bf16 slabs:
    student hidden -> lanes [0,32), teacher hidden -> lanes [32,96), student
    logits -> lanes [0,10), teacher logits -> lanes [64,74).  Every in-kernel
    matmul is an unmasked MXU op; all biases share one (8,128) f32 slab."""
    f32, bf16 = jnp.float32, jnp.bfloat16
    S, T, C = H_S, H_T, NUM_CLASSES
    d_in = p["s_w0"].shape[0]

    w0 = jnp.zeros((d_in, LANES), f32)
    w0 = w0.at[:, 0:S].set(p["s_w0"]).at[:, S:S + T].set(p["t_w0"])

    w1 = jnp.zeros((LANES, LANES), f32)                       # block-diagonal
    w1 = w1.at[0:S, 0:S].set(p["s_w1"]).at[S:S + T, S:S + T].set(p["t_w1"])

    # fused heads (student cls at [0,10), teacher cls at [64,74))
    wh = jnp.zeros((LANES, LANES), f32)
    wh = wh.at[0:S, 0:C].set(p["s_hw"])
    wh = wh.at[S:S + T, T_LOGIT_OFF:T_LOGIT_OFF + C].set(p["t_hw"])

    # fused encoder+decoder per block:
    #   enc rows [32,96) -> cols [0,32), dec rows [0,32) -> cols [32,96)
    ed = []
    for i in range(NUM_BLOCKS):
        m = jnp.zeros((LANES, LANES), f32)
        m = m.at[S:S + T, 0:S].set(p[f"e_w{i}"]).at[0:S, S:S + T].set(p[f"d_w{i}"])
        ed.append(m)

    def row(*segments):
        r = jnp.zeros((LANES,), f32)
        for off, v in segments:
            r = r.at[off:off + v.shape[0]].set(v.astype(f32))
        return r

    biases = jnp.stack([
        row((0, p["s_b0"]), (S, p["t_b0"])),                    # row 0: b0
        row((0, p["s_b1"]), (S, p["t_b1"])),                    # row 1: b1
        row((0, p["s_hb"]), (T_LOGIT_OFF, p["t_hb"])),          # row 2: bh (fused heads)
        row((0, p["e_b0"]), (S, p["d_b0"])),                    # row 3: bed0
        row((0, p["e_b1"]), (S, p["d_b1"])),                    # row 4: bed1
        jnp.zeros((LANES,), f32),
        jnp.zeros((LANES,), f32),
        jnp.zeros((LANES,), f32),
    ])                                                           # (8, 128)

    return {
        "w0": w0.astype(bf16),                                   # [D_IN, 128]
        "w1": w1.astype(bf16),                                   # [128, 128]
        "wh": wh.astype(bf16),                                   # [128, 128]
        "ed": jnp.stack(ed).astype(bf16),                        # [2, 128, 128]
        "biases": biases,                                        # [8, 128] f32
    }


# ------------------------ FeatureDistiller.forward ---------------------------
def get_random_bool(n):
    # same semantics as the PyTorch module (host-side python randomness);
    # only selects which *static* routing specialization is executed.
    if random.random() < 0.5:
        start = random.choice([True, False])
        pivot = random.randint(1, n - 1)
        return [start] * pivot + [not start] * (n - pivot)
    rand_bool = [random.choice([True, False]) for _ in range(n)]
    if len(set(rand_bool)) == 1:
        i = random.randrange(n)
        rand_bool[i] = not rand_bool[i]
    return rand_bool


@functools.partial(jax.jit, static_argnames=("from_teachers",))
def feature_distiller_forward(packed, pixel_values, labels, *, from_teachers):
    B = pixel_values.shape[0]
    x_flat = pixel_values.reshape(B, -1).astype(jnp.bfloat16)
    d_in = x_flat.shape[1]

    # Batch tiling: TM=128 rows per grid step (one MXU-height LHS tile on v5e;
    # collapses to the sublane-aligned batch at demo size).  The grid axis is
    # "parallel" so v7x's two TensorCores split the tiles.
    # TODO(synk): bump TM to 256 on v6e/v7x and add a K ("arbitrary") grid axis
    # over d_in (with an f32 accumulator scratch for the w0 matmul) for
    # production image sizes, re-deriving tiles against v7x's 64 MiB VMEM.
    b8 = max(8, ((B + 7) // 8) * 8)
    if b8 >= 128:
        tile_m = 128
        b_pad = ((b8 + 127) // 128) * 128
    else:
        tile_m = b8
        b_pad = b8
    num_tiles = b_pad // tile_m

    x_pad = jnp.pad(x_flat, ((0, b_pad - B), (0, 0)))
    labels_pad = jnp.pad(labels.astype(jnp.int32), (0, b_pad - B)).reshape(b_pad, 1)

    kernel = functools.partial(_distiller_kernel, from_teachers=from_teachers,
                               batch=B, tile_m=tile_m)

    weight_bytes = (d_in * LANES + (2 + NUM_BLOCKS) * LANES * LANES) * 2 + 8 * LANES * 4
    cost = pl.CostEstimate(
        flops=int(2 * b_pad * LANES * (d_in + 11 * LANES)),
        transcendentals=int(b_pad * LANES * 10),
        bytes_accessed=int(x_pad.size * 2 + labels_pad.size * 4 + weight_bytes
                           + b_pad * LANES * 4 + num_tiles * 8 * LANES * 4),
    )

    logits_pad, loss_partials = pl.pallas_call(
        kernel,
        grid=(num_tiles,),
        in_specs=[
            pl.BlockSpec((tile_m, d_in), lambda i: (i, 0)),            # x tile
            pl.BlockSpec((tile_m, 1), lambda i: (i, 0)),               # labels tile
            pl.BlockSpec((d_in, LANES), lambda i: (0, 0)),             # w0 (fetched once)
            pl.BlockSpec((LANES, LANES), lambda i: (0, 0)),            # w1
            pl.BlockSpec((LANES, LANES), lambda i: (0, 0)),            # wh (fused heads)
            pl.BlockSpec((NUM_BLOCKS, LANES, LANES), lambda i: (0, 0, 0)),  # fused enc+dec
            pl.BlockSpec((8, LANES), lambda i: (0, 0)),                # all biases
        ],
        out_specs=(
            pl.BlockSpec((tile_m, LANES), lambda i: (i, 0)),           # logits tile
            pl.BlockSpec((1, 8, LANES), lambda i: (i, 0, 0)),          # per-tile loss partials
        ),
        out_shape=(
            jax.ShapeDtypeStruct((b_pad, LANES), jnp.float32),
            jax.ShapeDtypeStruct((num_tiles, 8, LANES), jnp.float32),
        ),
        compiler_params=pltpu.CompilerParams(dimension_semantics=("parallel",)),
        cost_estimate=cost,
    )(x_pad, labels_pad, packed["w0"], packed["w1"], packed["wh"],
      packed["ed"], packed["biases"])

    # Tiny cross-tile reduction + batch-mean division in the wrapper keeps the
    # batch grid axis dependency-free ("parallel").
    per = loss_partials[:, 0, :].sum(axis=0) / B
    loss_hard, loss_soft = per[0], per[1]
    loss_feat_sync, loss_feat_recon, loss_cross = per[2], per[3], per[4]
    total = loss_hard + loss_soft + loss_feat_sync + loss_feat_recon + loss_cross

    return {
        "logits": logits_pad[:B, :NUM_CLASSES],
        "loss": total,
        "loss_hard": loss_hard,
        "loss_soft": loss_soft,
        "loss_feat_sync": loss_feat_sync,
        "loss_feat_recon": loss_feat_recon,
        "loss_cross": loss_cross,
    }


# ----------------------------------- main ------------------------------------
if __name__ == "__main__":
    random.seed(0)  # deterministic cross-block routing
    key = jax.random.PRNGKey(0)
    k_px, k_lbl, k_params = jax.random.split(key, 3)

    B, C, H, W = 2, 4, 16, 16
    D_IN = C * H * W

    pixel_values = jax.random.normal(k_px, (B, C, H, W), jnp.float32)
    labels = jax.random.randint(k_lbl, (B,), 0, NUM_CLASSES)
    raw_params = init_swapnet_params(k_params, D_IN, H_S, H_T, NUM_CLASSES)
    packed_params = pack_swapnet_params(raw_params)

    from_teachers = tuple(get_random_bool(NUM_BLOCKS))   # cross_mode == 'random'
    out = feature_distiller_forward(packed_params, pixel_values, labels,
                                    from_teachers=from_teachers)
    jax.block_until_ready(out["loss"])
    jax.block_until_ready(out["logits"])
    assert out["logits"].shape == (B, NUM_CLASSES)
    assert bool(jnp.isfinite(out["loss"]))
    for k in ("loss_hard", "loss_soft", "loss_feat_sync", "loss_feat_recon", "loss_cross"):
        assert bool(jnp.isfinite(out[k]))
    print("KERNEL_OK")
</pallas_src>

<mosaic_0001>
module attributes {stable_mosaic.version = 11 : i64} {
  func.func @_distiller_kernel(%arg0: i32, %arg1: memref<8x1024xbf16, #tpu.memory_space<vmem>>, %arg2: memref<8x1xi32, #tpu.memory_space<vmem>>, %arg3: memref<1024x128xbf16, #tpu.memory_space<vmem>>, %arg4: memref<128x128xbf16, #tpu.memory_space<vmem>>, %arg5: memref<128x128xbf16, #tpu.memory_space<vmem>>, %arg6: memref<2x128x128xbf16, #tpu.memory_space<vmem>>, %arg7: memref<8x128xf32, #tpu.memory_space<vmem>>, %arg8: memref<8x128xf32, #tpu.memory_space<vmem>>, %arg9: memref<1x8x128xf32, #tpu.memory_space<vmem>>) attributes {dimension_semantics = [#tpu.dimension_semantics<parallel>], iteration_bounds = array<i64: 1>, scalar_prefetch = 0 : i64, scratch_operands = 0 : i64, tpu.core_type = #tpu.core_type<tc>, window_params = [{transform_indices = @transform_0, window_bounds = array<i64: 8, 1024>}, {transform_indices = @transform_1, window_bounds = array<i64: 8, 1>}, {pipeline_mode = #tpu.pipeline_mode<synchronous>, transform_indices = @transform_2, window_bounds = array<i64: 1024, 128>}, {pipeline_mode = #tpu.pipeline_mode<synchronous>, transform_indices = @transform_3, window_bounds = array<i64: 128, 128>}, {pipeline_mode = #tpu.pipeline_mode<synchronous>, transform_indices = @transform_4, window_bounds = array<i64: 128, 128>}, {pipeline_mode = #tpu.pipeline_mode<synchronous>, transform_indices = @transform_5, window_bounds = array<i64: 2, 128, 128>}, {pipeline_mode = #tpu.pipeline_mode<synchronous>, transform_indices = @transform_6, window_bounds = array<i64: 8, 128>}, {transform_indices = @transform_7, window_bounds = array<i64: 8, 128>}, {transform_indices = @transform_8, window_bounds = array<i64: 1, 8, 128>}]} {
    %0 = tpu.iota {dimensions = array<i32: 1>} : vector<1x128xi32>
    %1 = tpu.iota {dimensions = array<i32: 0>} : vector<8x1xi32>
    %c8_i32 = arith.constant 8 : i32
    %2 = arith.muli %arg0, %c8_i32 : i32
    %3 = vector.broadcast %2 : i32 to vector<8x1xi32>
    %4 = arith.addi %1, %3 : vector<8x1xi32>
    %c2_i32 = arith.constant 2 : i32
    %5 = vector.broadcast %c2_i32 : i32 to vector<8x1xi32>
    %6 = arith.cmpi slt, %4, %5 : vector<8x1xi32>
    %7 = arith.extui %6 : vector<8x1xi1> to vector<8x1xi32>
    %8 = arith.sitofp %7 : vector<8x1xi32> to vector<8x1xf32>
    %c32_i32 = arith.constant 32 : i32
    %9 = vector.broadcast %c32_i32 : i32 to vector<1x128xi32>
    %10 = arith.cmpi slt, %0, %9 : vector<1x128xi32>
    %11 = arith.extui %10 : vector<1x128xi1> to vector<1x128xi32>
    %12 = arith.sitofp %11 : vector<1x128xi32> to vector<1x128xf32>
    %c32_i32_0 = arith.constant 32 : i32
    %13 = vector.broadcast %c32_i32_0 : i32 to vector<1x128xi32>
    %14 = arith.cmpi sge, %0, %13 : vector<1x128xi32>
    %c96_i32 = arith.constant 96 : i32
    %15 = vector.broadcast %c96_i32 : i32 to vector<1x128xi32>
    %16 = arith.cmpi slt, %0, %15 : vector<1x128xi32>
    %17 = arith.andi %14, %16 : vector<1x128xi1>
    %18 = arith.extui %17 : vector<1x128xi1> to vector<1x128xi32>
    %19 = arith.sitofp %18 : vector<1x128xi32> to vector<1x128xf32>
    %c10_i32 = arith.constant 10 : i32
    %20 = vector.broadcast %c10_i32 : i32 to vector<1x128xi32>
    %21 = arith.cmpi slt, %0, %20 : vector<1x128xi32>
    %c0 = arith.constant 0 : index
    %c0_1 = arith.constant 0 : index
    %22 = vector.load %arg3[%c0, %c0_1] : memref<1024x128xbf16, #tpu.memory_space<vmem>>, vector<1024x128xbf16>
    %c0_2 = arith.constant 0 : index
    %c0_3 = arith.constant 0 : index
    %23 = vector.load %arg4[%c0_2, %c0_3] : memref<128x128xbf16, #tpu.memory_space<vmem>>, vector<128x128xbf16>
    %c0_4 = arith.constant 0 : index
    %c0_5 = arith.constant 0 : index
    %24 = vector.load %arg5[%c0_4, %c0_5] : memref<128x128xbf16, #tpu.memory_space<vmem>>, vector<128x128xbf16>
    %c0_6 = arith.constant 0 : index
    %c0_7 = arith.constant 0 : index
    %c0_8 = arith.constant 0 : index
    %25 = vector.load %arg6[%c0_6, %c0_7, %c0_8] : memref<2x128x128xbf16, #tpu.memory_space<vmem>>, vector<1x128x128xbf16>
    %26 = vector.shape_cast %25 : vector<1x128x128xbf16> to vector<128x128xbf16>
    %c1 = arith.constant 1 : index
    %c0_9 = arith.constant 0 : index
    %c0_10 = arith.constant 0 : index
    %27 = vector.load %arg6[%c1, %c0_9, %c0_10] : memref<2x128x128xbf16, #tpu.memory_space<vmem>>, vector<1x128x128xbf16>
    %28 = vector.shape_cast %27 : vector<1x128x128xbf16> to vector<128x128xbf16>
    %c0_11 = arith.constant 0 : index
    %c0_12 = arith.constant 0 : index
    %29 = vector.load %arg7[%c0_11, %c0_12] : memref<8x128xf32, #tpu.memory_space<vmem>>, vector<8x128xf32>
    %30 = vector.extract_strided_slice %29 {offsets = [0, 0], sizes = [1, 128], strides = [1, 1]} : vector<8x128xf32> to vector<1x128xf32>
    %31 = vector.extract_strided_slice %29 {offsets = [1, 0], sizes = [1, 128], strides = [1, 1]} : vector<8x128xf32> to vector<1x128xf32>
    %32 = vector.extract_strided_slice %29 {offsets = [2, 0], sizes = [1, 128], strides = [1, 1]} : vector<8x128xf32> to vector<1x128xf32>
    %33 = vector.extract_strided_slice %29 {offsets = [3, 0], sizes = [1, 128], strides = [1, 1]} : vector<8x128xf32> to vector<1x128xf32>
    %34 = vector.extract_strided_slice %29 {offsets = [4, 0], sizes = [1, 128], strides = [1, 1]} : vector<8x128xf32> to vector<1x128xf32>
    %c0_13 = arith.constant 0 : index
    %c0_14 = arith.constant 0 : index
    %35 = vector.load %arg1[%c0_13, %c0_14] : memref<8x1024xbf16, #tpu.memory_space<vmem>>, vector<8x1024xbf16>
    %cst = arith.constant dense<0.000000e+00> : vector<8x128xf32>
    %36 = tpu.matmul %35, %22, %cst {dimension_numbers = #tpu.dot_dimension_numbers<[1], [0], [0], [1], [0, 0, 1, 1], [], []>} : vector<8x1024xbf16>, vector<1024x128xbf16>, vector<8x128xf32> -> vector<8x128xf32>
    %37 = vector.broadcast %30 : vector<1x128xf32> to vector<8x128xf32>
    %38 = arith.addf %36, %37 : vector<8x128xf32>
    %cst_15 = arith.constant 0.000000e+00 : f32
    %39 = vector.broadcast %cst_15 : f32 to vector<8x128xf32>
    %40 = arith.maximumf %38, %39 : vector<8x128xf32>
    %41 = arith.truncf %40 : vector<8x128xf32> to vector<8x128xbf16>
    %cst_16 = arith.constant dense<0.000000e+00> : vector<8x128xf32>
    %42 = tpu.matmul %41, %26, %cst_16 {dimension_numbers = #tpu.dot_dimension_numbers<[1], [0], [0], [1], [0, 0, 1, 1], [], []>} : vector<8x128xbf16>, vector<128x128xbf16>, vector<8x128xf32> -> vector<8x128xf32>
    %43 = vector.broadcast %33 : vector<1x128xf32> to vector<8x128xf32>
    %44 = arith.addf %42, %43 : vector<8x128xf32>
    %45 = arith.truncf %44 : vector<8x128xf32> to vector<8x128xbf16>
    %cst_17 = arith.constant dense<0.000000e+00> : vector<8x128xf32>
    %46 = tpu.matmul %45, %26, %cst_17 {dimension_numbers = #tpu.dot_dimension_numbers<[1], [0], [0], [1], [0, 0, 1, 1], [], []>} : vector<8x128xbf16>, vector<128x128xbf16>, vector<8x128xf32> -> vector<8x128xf32>
    %47 = vector.broadcast %33 : vector<1x128xf32> to vector<8x128xf32>
    %48 = arith.addf %46, %47 : vector<8x128xf32>
    %49 = vector.broadcast %12 : vector<1x128xf32> to vector<8x128xf32>
    %50 = arith.mulf %40, %49 : vector<8x128xf32>
    %51 = vector.broadcast %12 : vector<1x128xf32> to vector<8x128xf32>
    %52 = arith.mulf %44, %51 : vector<8x128xf32>
    %53 = arith.subf %50, %52 : vector<8x128xf32>
    %54 = arith.mulf %53, %53 : vector<8x128xf32>
    %cst_18 = arith.constant dense<0.000000e+00> : vector<8xf32>
    %55 = vector.multi_reduction <add>, %54, %cst_18 [1] : vector<8x128xf32> to vector<8xf32>
    %56 = vector.shape_cast %55 : vector<8xf32> to vector<8x1xf32>
    %cst_19 = arith.constant 3.125000e-02 : f32
    %57 = vector.broadcast %cst_19 : f32 to vector<8x1xf32>
    %58 = arith.mulf %56, %57 : vector<8x1xf32>
    %59 = arith.mulf %50, %52 : vector<8x128xf32>
    %cst_20 = arith.constant dense<0.000000e+00> : vector<8xf32>
    %60 = vector.multi_reduction <add>, %59, %cst_20 [1] : vector<8x128xf32> to vector<8xf32>
    %61 = vector.shape_cast %60 : vector<8xf32> to vector<8x1xf32>
    %62 = arith.mulf %50, %50 : vector<8x128xf32>
    %cst_21 = arith.constant dense<0.000000e+00> : vector<8xf32>
    %63 = vector.multi_reduction <add>, %62, %cst_21 [1] : vector<8x128xf32> to vector<8xf32>
    %64 = vector.shape_cast %63 : vector<8xf32> to vector<8x1xf32>
    %65 = math.sqrt %64 : vector<8x1xf32>
    %66 = arith.mulf %52, %52 : vector<8x128xf32>
    %cst_22 = arith.constant dense<0.000000e+00> : vector<8xf32>
    %67 = vector.multi_reduction <add>, %66, %cst_22 [1] : vector<8x128xf32> to vector<8xf32>
    %68 = vector.shape_cast %67 : vector<8xf32> to vector<8x1xf32>
    %69 = math.sqrt %68 : vector<8x1xf32>
    %70 = arith.mulf %65, %69 : vector<8x1xf32>
    %cst_23 = arith.constant 9.99999993E-9 : f32
    %71 = vector.broadcast %cst_23 : f32 to vector<8x1xf32>
    %72 = arith.maximumf %70, %71 : vector<8x1xf32>
    %73 = arith.divf %61, %72 : vector<8x1xf32>
    %cst_24 = arith.constant 1.000000e+00 : f32
    %74 = vector.broadcast %cst_24 : f32 to vector<8x1xf32>
    %75 = arith.subf %74, %73 : vector<8x1xf32>
    %76 = arith.addf %58, %75 : vector<8x1xf32>
    %77 = vector.broadcast %19 : vector<1x128xf32> to vector<8x128xf32>
    %78 = arith.mulf %40, %77 : vector<8x128xf32>
    %79 = vector.broadcast %19 : vector<1x128xf32> to vector<8x128xf32>
    %80 = arith.mulf %44, %79 : vector<8x128xf32>
    %81 = arith.subf %78, %80 : vector<8x128xf32>
    %82 = arith.mulf %81, %81 : vector<8x128xf32>
    %cst_25 = arith.constant dense<0.000000e+00> : vector<8xf32>
    %83 = vector.multi_reduction <add>, %82, %cst_25 [1] : vector<8x128xf32> to vector<8xf32>
    %84 = vector.shape_cast %83 : vector<8xf32> to vector<8x1xf32>
    %cst_26 = arith.constant 1.562500e-02 : f32
    %85 = vector.broadcast %cst_26 : f32 to vector<8x1xf32>
    %86 = arith.mulf %84, %85 : vector<8x1xf32>
    %87 = arith.mulf %78, %80 : vector<8x128xf32>
    %cst_27 = arith.constant dense<0.000000e+00> : vector<8xf32>
    %88 = vector.multi_reduction <add>, %87, %cst_27 [1] : vector<8x128xf32> to vector<8xf32>
    %89 = vector.shape_cast %88 : vector<8xf32> to vector<8x1xf32>
    %90 = arith.mulf %78, %78 : vector<8x128xf32>
    %cst_28 = arith.constant dense<0.000000e+00> : vector<8xf32>
    %91 = vector.multi_reduction <add>, %90, %cst_28 [1] : vector<8x128xf32> to vector<8xf32>
    %92 = vector.shape_cast %91 : vector<8xf32> to vector<8x1xf32>
    %93 = math.sqrt %92 : vector<8x1xf32>
    %94 = arith.mulf %80, %80 : vector<8x128xf32>
    %cst_29 = arith.constant dense<0.000000e+00> : vector<8xf32>
    %95 = vector.multi_reduction <add>, %94, %cst_29 [1] : vector<8x128xf32> to vector<8xf32>
    %96 = vector.shape_cast %95 : vector<8xf32> to vector<8x1xf32>
    %97 = math.sqrt %96 : vector<8x1xf32>
    %98 = arith.mulf %93, %97 : vector<8x1xf32>
    %cst_30 = arith.constant 9.99999993E-9 : f32
    %99 = vector.broadcast %cst_30 : f32 to vector<8x1xf32>
    %100 = arith.maximumf %98, %99 : vector<8x1xf32>
    %101 = arith.divf %89, %100 : vector<8x1xf32>
    %cst_31 = arith.constant 1.000000e+00 : f32
    %102 = vector.broadcast %cst_31 : f32 to vector<8x1xf32>
    %103 = arith.subf %102, %101 : vector<8x1xf32>
    %104 = arith.addf %86, %103 : vector<8x1xf32>
    %105 = arith.addf %76, %104 : vector<8x1xf32>
    %106 = vector.broadcast %19 : vector<1x128xf32> to vector<8x128xf32>
    %107 = arith.mulf %40, %106 : vector<8x128xf32>
    %108 = vector.broadcast %19 : vector<1x128xf32> to vector<8x128xf32>
    %109 = arith.mulf %48, %108 : vector<8x128xf32>
    %110 = arith.subf %107, %109 : vector<8x128xf32>
    %111 = arith.mulf %110, %110 : vector<8x128xf32>
    %cst_32 = arith.constant dense<0.000000e+00> : vector<8xf32>
    %112 = vector.multi_reduction <add>, %111, %cst_32 [1] : vector<8x128xf32> to vector<8xf32>
    %113 = vector.shape_cast %112 : vector<8xf32> to vector<8x1xf32>
    %cst_33 = arith.constant 1.562500e-02 : f32
    %114 = vector.broadcast %cst_33 : f32 to vector<8x1xf32>
    %115 = arith.mulf %113, %114 : vector<8x1xf32>
    %116 = arith.mulf %107, %109 : vector<8x128xf32>
    %cst_34 = arith.constant dense<0.000000e+00> : vector<8xf32>
    %117 = vector.multi_reduction <add>, %116, %cst_34 [1] : vector<8x128xf32> to vector<8xf32>
    %118 = vector.shape_cast %117 : vector<8xf32> to vector<8x1xf32>
    %119 = arith.mulf %107, %107 : vector<8x128xf32>
    %cst_35 = arith.constant dense<0.000000e+00> : vector<8xf32>
    %120 = vector.multi_reduction <add>, %119, %cst_35 [1] : vector<8x128xf32> to vector<8xf32>
    %121 = vector.shape_cast %120 : vector<8xf32> to vector<8x1xf32>
    %122 = math.sqrt %121 : vector<8x1xf32>
    %123 = arith.mulf %109, %109 : vector<8x128xf32>
    %cst_36 = arith.constant dense<0.000000e+00> : vector<8xf32>
    %124 = vector.multi_reduction <add>, %123, %cst_36 [1] : vector<8x128xf32> to vector<8xf32>
    %125 = vector.shape_cast %124 : vector<8xf32> to vector<8x1xf32>
    %126 = math.sqrt %125 : vector<8x1xf32>
    %127 = arith.mulf %122, %126 : vector<8x1xf32>
    %cst_37 = arith.constant 9.99999993E-9 : f32
    %128 = vector.broadcast %cst_37 : f32 to vector<8x1xf32>
    %129 = arith.maximumf %127, %128 : vector<8x1xf32>
    %130 = arith.divf %118, %129 : vector<8x1xf32>
    %cst_38 = arith.constant 1.000000e+00 : f32
    %131 = vector.broadcast %cst_38 : f32 to vector<8x1xf32>
    %132 = arith.subf %131, %130 : vector<8x1xf32>
    %133 = arith.addf %115, %132 : vector<8x1xf32>
    %134 = vector.broadcast %12 : vector<1x128xf32> to vector<8x128xf32>
    %135 = arith.mulf %40, %134 : vector<8x128xf32>
    %136 = vector.broadcast %12 : vector<1x128xf32> to vector<8x128xf32>
    %137 = arith.mulf %48, %136 : vector<8x128xf32>
    %138 = arith.subf %135, %137 : vector<8x128xf32>
    %139 = arith.mulf %138, %138 : vector<8x128xf32>
    %cst_39 = arith.constant dense<0.000000e+00> : vector<8xf32>
    %140 = vector.multi_reduction <add>, %139, %cst_39 [1] : vector<8x128xf32> to vector<8xf32>
    %141 = vector.shape_cast %140 : vector<8xf32> to vector<8x1xf32>
    %cst_40 = arith.constant 3.125000e-02 : f32
    %142 = vector.broadcast %cst_40 : f32 to vector<8x1xf32>
    %143 = arith.mulf %141, %142 : vector<8x1xf32>
    %144 = arith.mulf %135, %137 : vector<8x128xf32>
    %cst_41 = arith.constant dense<0.000000e+00> : vector<8xf32>
    %145 = vector.multi_reduction <add>, %144, %cst_41 [1] : vector<8x128xf32> to vector<8xf32>
    %146 = vector.shape_cast %145 : vector<8xf32> to vector<8x1xf32>
    %147 = arith.mulf %135, %135 : vector<8x128xf32>
    %cst_42 = arith.constant dense<0.000000e+00> : vector<8xf32>
    %148 = vector.multi_reduction <add>, %147, %cst_42 [1] : vector<8x128xf32> to vector<8xf32>
    %149 = vector.shape_cast %148 : vector<8xf32> to vector<8x1xf32>
    %150 = math.sqrt %149 : vector<8x1xf32>
    %151 = arith.mulf %137, %137 : vector<8x128xf32>
    %cst_43 = arith.constant dense<0.000000e+00> : vector<8xf32>
    %152 = vector.multi_reduction <add>, %151, %cst_43 [1] : vector<8x128xf32> to vector<8xf32>
    %153 = vector.shape_cast %152 : vector<8xf32> to vector<8x1xf32>
    %154 = math.sqrt %153 : vector<8x1xf32>
    %155 = arith.mulf %150, %154 : vector<8x1xf32>
    %cst_44 = arith.constant 9.99999993E-9 : f32
    %156 = vector.broadcast %cst_44 : f32 to vector<8x1xf32>
    %157 = arith.maximumf %155, %156 : vector<8x1xf32>
    %158 = arith.divf %146, %157 : vector<8x1xf32>
    %cst_45 = arith.constant 1.000000e+00 : f32
    %159 = vector.broadcast %cst_45 : f32 to vector<8x1xf32>
    %160 = arith.subf %159, %158 : vector<8x1xf32>
    %161 = arith.addf %143, %160 : vector<8x1xf32>
    %162 = arith.addf %133, %161 : vector<8x1xf32>
    %163 = arith.truncf %40 : vector<8x128xf32> to vector<8x128xbf16>
    %cst_46 = arith.constant dense<0.000000e+00> : vector<8x128xf32>
    %164 = tpu.matmul %163, %23, %cst_46 {dimension_numbers = #tpu.dot_dimension_numbers<[1], [0], [0], [1], [0, 0, 1, 1], [], []>} : vector<8x128xbf16>, vector<128x128xbf16>, vector<8x128xf32> -> vector<8x128xf32>
    %165 = vector.broadcast %31 : vector<1x128xf32> to vector<8x128xf32>
    %166 = arith.addf %164, %165 : vector<8x128xf32>
    %cst_47 = arith.constant 0.000000e+00 : f32
    %167 = vector.broadcast %cst_47 : f32 to vector<8x128xf32>
    %168 = arith.maximumf %166, %167 : vector<8x128xf32>
    %169 = arith.truncf %168 : vector<8x128xf32> to vector<8x128xbf16>
    %cst_48 = arith.constant dense<0.000000e+00> : vector<8x128xf32>
    %170 = tpu.matmul %169, %28, %cst_48 {dimension_numbers = #tpu.dot_dimension_numbers<[1], [0], [0], [1], [0, 0, 1, 1], [], []>} : vector<8x128xbf16>, vector<128x128xbf16>, vector<8x128xf32> -> vector<8x128xf32>
    %171 = vector.broadcast %34 : vector<1x128xf32> to vector<8x128xf32>
    %172 = arith.addf %170, %171 : vector<8x128xf32>
    %173 = arith.truncf %172 : vector<8x128xf32> to vector<8x128xbf16>
    %cst_49 = arith.constant dense<0.000000e+00> : vector<8x128xf32>
    %174 = tpu.matmul %173, %28, %cst_49 {dimension_numbers = #tpu.dot_dimension_numbers<[1], [0], [0], [1], [0, 0, 1, 1], [], []>} : vector<8x128xbf16>, vector<128x128xbf16>, vector<8x128xf32> -> vector<8x128xf32>
    %175 = vector.broadcast %34 : vector<1x128xf32> to vector<8x128xf32>
    %176 = arith.addf %174, %175 : vector<8x128xf32>
    %177 = vector.broadcast %12 : vector<1x128xf32> to vector<8x128xf32>
    %178 = arith.mulf %168, %177 : vector<8x128xf32>
    %179 = vector.broadcast %12 : vector<1x128xf32> to vector<8x128xf32>
    %180 = arith.mulf %172, %179 : vector<8x128xf32>
    %181 = arith.subf %178, %180 : vector<8x128xf32>
    %182 = arith.mulf %181, %181 : vector<8x128xf32>
    %cst_50 = arith.constant dense<0.000000e+00> : vector<8xf32>
    %183 = vector.multi_reduction <add>, %182, %cst_50 [1] : vector<8x128xf32> to vector<8xf32>
    %184 = vector.shape_cast %183 : vector<8xf32> to vector<8x1xf32>
    %cst_51 = arith.constant 3.125000e-02 : f32
    %185 = vector.broadcast %cst_51 : f32 to vector<8x1xf32>
    %186 = arith.mulf %184, %185 : vector<8x1xf32>
    %187 = arith.mulf %178, %180 : vector<8x128xf32>
    %cst_52 = arith.constant dense<0.000000e+00> : vector<8xf32>
    %188 = vector.multi_reduction <add>, %187, %cst_52 [1] : vector<8x128xf32> to vector<8xf32>
    %189 = vector.shape_cast %188 : vector<8xf32> to vector<8x1xf32>
    %190 = arith.mulf %178, %178 : vector<8x128xf32>
    %cst_53 = arith.constant dense<0.000000e+00> : vector<8xf32>
    %191 = vector.multi_reduction <add>, %190, %cst_53 [1] : vector<8x128xf32> to vector<8xf32>
    %192 = vector.shape_cast %191 : vector<8xf32> to vector<8x1xf32>
    %193 = math.sqrt %192 : vector<8x1xf32>
    %194 = arith.mulf %180, %180 : vector<8x128xf32>
    %cst_54 = arith.constant dense<0.000000e+00> : vector<8xf32>
    %195 = vector.multi_reduction <add>, %194, %cst_54 [1] : vector<8x128xf32> to vector<8xf32>
    %196 = vector.shape_cast %195 : vector<8xf32> to vector<8x1xf32>
    %197 = math.sqrt %196 : vector<8x1xf32>
    %198 = arith.mulf %193, %197 : vector<8x1xf32>
    %cst_55 = arith.constant 9.99999993E-9 : f32
    %199 = vector.broadcast %cst_55 : f32 to vector<8x1xf32>
    %200 = arith.maximumf %198, %199 : vector<8x1xf32>
    %201 = arith.divf %189, %200 : vector<8x1xf32>
    %cst_56 = arith.constant 1.000000e+00 : f32
    %202 = vector.broadcast %cst_56 : f32 to vector<8x1xf32>
    %203 = arith.subf %202, %201 : vector<8x1xf32>
    %204 = arith.addf %186, %203 : vector<8x1xf32>
    %205 = arith.addf %105, %204 : vector<8x1xf32>
    %206 = vector.broadcast %19 : vector<1x128xf32> to vector<8x128xf32>
    %207 = arith.mulf %168, %206 : vector<8x128xf32>
    %208 = vector.broadcast %19 : vector<1x128xf32> to vector<8x128xf32>
    %209 = arith.mulf %172, %208 : vector<8x128xf32>
    %210 = arith.subf %207, %209 : vector<8x128xf32>
    %211 = arith.mulf %210, %210 : vector<8x128xf32>
    %cst_57 = arith.constant dense<0.000000e+00> : vector<8xf32>
    %212 = vector.multi_reduction <add>, %211, %cst_57 [1] : vector<8x128xf32> to vector<8xf32>
    %213 = vector.shape_cast %212 : vector<8xf32> to vector<8x1xf32>
    %cst_58 = arith.constant 1.562500e-02 : f32
    %214 = vector.broadcast %cst_58 : f32 to vector<8x1xf32>
    %215 = arith.mulf %213, %214 : vector<8x1xf32>
    %216 = arith.mulf %207, %209 : vector<8x128xf32>
    %cst_59 = arith.constant dense<0.000000e+00> : vector<8xf32>
    %217 = vector.multi_reduction <add>, %216, %cst_59 [1] : vector<8x128xf32> to vector<8xf32>
    %218 = vector.shape_cast %217 : vector<8xf32> to vector<8x1xf32>
    %219 = arith.mulf %207, %207 : vector<8x128xf32>
    %cst_60 = arith.constant dense<0.000000e+00> : vector<8xf32>
    %220 = vector.multi_reduction <add>, %219, %cst_60 [1] : vector<8x128xf32> to vector<8xf32>
    %221 = vector.shape_cast %220 : vector<8xf32> to vector<8x1xf32>
    %222 = math.sqrt %221 : vector<8x1xf32>
    %223 = arith.mulf %209, %209 : vector<8x128xf32>
    %cst_61 = arith.constant dense<0.000000e+00> : vector<8xf32>
    %224 = vector.multi_reduction <add>, %223, %cst_61 [1] : vector<8x128xf32> to vector<8xf32>
    %225 = vector.shape_cast %224 : vector<8xf32> to vector<8x1xf32>
    %226 = math.sqrt %225 : vector<8x1xf32>
    %227 = arith.mulf %222, %226 : vector<8x1xf32>
    %cst_62 = arith.constant 9.99999993E-9 : f32
    %228 = vector.broadcast %cst_62 : f32 to vector<8x1xf32>
    %229 = arith.maximumf %227, %228 : vector<8x1xf32>
    %230 = arith.divf %218, %229 : vector<8x1xf32>
    %cst_63 = arith.constant 1.000000e+00 : f32
    %231 = vector.broadcast %cst_63 : f32 to vector<8x1xf32>
    %232 = arith.subf %231, %230 : vector<8x1xf32>
    %233 = arith.addf %215, %232 : vector<8x1xf32>
    %234 = arith.addf %205, %233 : vector<8x1xf32>
    %235 = vector.broadcast %19 : vector<1x128xf32> to vector<8x128xf32>
    %236 = arith.mulf %168, %235 : vector<8x128xf32>
    %237 = vector.broadcast %19 : vector<1x128xf32> to vector<8x128xf32>
    %238 = arith.mulf %176, %237 : vector<8x128xf32>
    %239 = arith.subf %236, %238 : vector<8x128xf32>
    %240 = arith.mulf %239, %239 : vector<8x128xf32>
    %cst_64 = arith.constant dense<0.000000e+00> : vector<8xf32>
    %241 = vector.multi_reduction <add>, %240, %cst_64 [1] : vector<8x128xf32> to vector<8xf32>
    %242 = vector.shape_cast %241 : vector<8xf32> to vector<8x1xf32>
    %cst_65 = arith.constant 1.562500e-02 : f32
    %243 = vector.broadcast %cst_65 : f32 to vector<8x1xf32>
    %244 = arith.mulf %242, %243 : vector<8x1xf32>
    %245 = arith.mulf %236, %238 : vector<8x128xf32>
    %cst_66 = arith.constant dense<0.000000e+00> : vector<8xf32>
    %246 = vector.multi_reduction <add>, %245, %cst_66 [1] : vector<8x128xf32> to vector<8xf32>
    %247 = vector.shape_cast %246 : vector<8xf32> to vector<8x1xf32>
    %248 = arith.mulf %236, %236 : vector<8x128xf32>
    %cst_67 = arith.constant dense<0.000000e+00> : vector<8xf32>
    %249 = vector.multi_reduction <add>, %248, %cst_67 [1] : vector<8x128xf32> to vector<8xf32>
    %250 = vector.shape_cast %249 : vector<8xf32> to vector<8x1xf32>
    %251 = math.sqrt %250 : vector<8x1xf32>
    %252 = arith.mulf %238, %238 : vector<8x128xf32>
    %cst_68 = arith.constant dense<0.000000e+00> : vector<8xf32>
    %253 = vector.multi_reduction <add>, %252, %cst_68 [1] : vector<8x128xf32> to vector<8xf32>
    %254 = vector.shape_cast %253 : vector<8xf32> to vector<8x1xf32>
    %255 = math.sqrt %254 : vector<8x1xf32>
    %256 = arith.mulf %251, %255 : vector<8x1xf32>
    %cst_69 = arith.constant 9.99999993E-9 : f32
    %257 = vector.broadcast %cst_69 : f32 to vector<8x1xf32>
    %258 = arith.maximumf %256, %257 : vector<8x1xf32>
    %259 = arith.divf %247, %258 : vector<8x1xf32>
    %cst_70 = arith.constant 1.000000e+00 : f32
    %260 = vector.broadcast %cst_70 : f32 to vector<8x1xf32>
    %261 = arith.subf %260, %259 : vector<8x1xf32>
    %262 = arith.addf %244, %261 : vector<8x1xf32>
    %263 = arith.addf %162, %262 : vector<8x1xf32>
    %264 = vector.broadcast %12 : vector<1x128xf32> to vector<8x128xf32>
    %265 = arith.mulf %168, %264 : vector<8x128xf32>
    %266 = vector.broadcast %12 : vector<1x128xf32> to vector<8x128xf32>
    %267 = arith.mulf %176, %266 : vector<8x128xf32>
    %268 = arith.subf %265, %267 : vector<8x128xf32>
    %269 = arith.mulf %268, %268 : vector<8x128xf32>
    %cst_71 = arith.constant dense<0.000000e+00> : vector<8xf32>
    %270 = vector.multi_reduction <add>, %269, %cst_71 [1] : vector<8x128xf32> to vector<8xf32>
    %271 = vector.shape_cast %270 : vector<8xf32> to vector<8x1xf32>
    %cst_72 = arith.constant 3.125000e-02 : f32
    %272 = vector.broadcast %cst_72 : f32 to vector<8x1xf32>
    %273 = arith.mulf %271, %272 : vector<8x1xf32>
    %274 = arith.mulf %265, %267 : vector<8x128xf32>
    %cst_73 = arith.constant dense<0.000000e+00> : vector<8xf32>
    %275 = vector.multi_reduction <add>, %274, %cst_73 [1] : vector<8x128xf32> to vector<8xf32>
    %276 = vector.shape_cast %275 : vector<8xf32> to vector<8x1xf32>
    %277 = arith.mulf %265, %265 : vector<8x128xf32>
    %cst_74 = arith.constant dense<0.000000e+00> : vector<8xf32>
    %278 = vector.multi_reduction <add>, %277, %cst_74 [1] : vector<8x128xf32> to vector<8xf32>
    %279 = vector.shape_cast %278 : vector<8xf32> to vector<8x1xf32>
    %280 = math.sqrt %279 : vector<8x1xf32>
    %281 = arith.mulf %267, %267 : vector<8x128xf32>
    %cst_75 = arith.constant dense<0.000000e+00> : vector<8xf32>
    %282 = vector.multi_reduction <add>, %281, %cst_75 [1] : vector<8x128xf32> to vector<8xf32>
    %283 = vector.shape_cast %282 : vector<8xf32> to vector<8x1xf32>
    %284 = math.sqrt %283 : vector<8x1xf32>
    %285 = arith.mulf %280, %284 : vector<8x1xf32>
    %cst_76 = arith.constant 9.99999993E-9 : f32
    %286 = vector.broadcast %cst_76 : f32 to vector<8x1xf32>
    %287 = arith.maximumf %285, %286 : vector<8x1xf32>
    %288 = arith.divf %276, %287 : vector<8x1xf32>
    %cst_77 = arith.constant 1.000000e+00 : f32
    %289 = vector.broadcast %cst_77 : f32 to vector<8x1xf32>
    %290 = arith.subf %289, %288 : vector<8x1xf32>
    %291 = arith.addf %273, %290 : vector<8x1xf32>
    %292 = arith.addf %263, %291 : vector<8x1xf32>
    %293 = vector.broadcast %19 : vector<1x128xf32> to vector<8x128xf32>
    %294 = arith.mulf %44, %293 : vector<8x128xf32>
    %295 = arith.truncf %294 : vector<8x128xf32> to vector<8x128xbf16>
    %cst_78 = arith.constant dense<0.000000e+00> : vector<8x128xf32>
    %296 = tpu.matmul %295, %23, %cst_78 {dimension_numbers = #tpu.dot_dimension_numbers<[1], [0], [0], [1], [0, 0, 1, 1], [], []>} : vector<8x128xbf16>, vector<128x128xbf16>, vector<8x128xf32> -> vector<8x128xf32>
    %297 = arith.mulf %31, %19 : vector<1x128xf32>
    %298 = vector.broadcast %297 : vector<1x128xf32> to vector<8x128xf32>
    %299 = arith.addf %296, %298 : vector<8x128xf32>
    %cst_79 = arith.constant 0.000000e+00 : f32
    %300 = vector.broadcast %cst_79 : f32 to vector<8x128xf32>
    %301 = arith.maximumf %299, %300 : vector<8x128xf32>
    %302 = arith.truncf %301 : vector<8x128xf32> to vector<8x128xbf16>
    %cst_80 = arith.constant dense<0.000000e+00> : vector<8x128xf32>
    %303 = tpu.matmul %302, %28, %cst_80 {dimension_numbers = #tpu.dot_dimension_numbers<[1], [0], [0], [1], [0, 0, 1, 1], [], []>} : vector<8x128xbf16>, vector<128x128xbf16>, vector<8x128xf32> -> vector<8x128xf32>
    %304 = vector.broadcast %34 : vector<1x128xf32> to vector<8x128xf32>
    %305 = arith.addf %303, %304 : vector<8x128xf32>
    %306 = vector.broadcast %12 : vector<1x128xf32> to vector<8x128xf32>
    %307 = arith.mulf %305, %306 : vector<8x128xf32>
    %308 = arith.truncf %168 : vector<8x128xf32> to vector<8x128xbf16>
    %cst_81 = arith.constant dense<0.000000e+00> : vector<8x128xf32>
    %309 = tpu.matmul %308, %24, %cst_81 {dimension_numbers = #tpu.dot_dimension_numbers<[1], [0], [0], [1], [0, 0, 1, 1], [], []>} : vector<8x128xbf16>, vector<128x128xbf16>, vector<8x128xf32> -> vector<8x128xf32>
    %310 = vector.broadcast %32 : vector<1x128xf32> to vector<8x128xf32>
    %311 = arith.addf %309, %310 : vector<8x128xf32>
    %c64_i32 = arith.constant 64 : i32
    %312 = tpu.dynamic_rotate %311 by %c64_i32 dim 1 : vector<8x128xf32>, i32 -> vector<8x128xf32>
    %313 = arith.truncf %307 : vector<8x128xf32> to vector<8x128xbf16>
    %cst_82 = arith.constant dense<0.000000e+00> : vector<8x128xf32>
    %314 = tpu.matmul %313, %24, %cst_82 {dimension_numbers = #tpu.dot_dimension_numbers<[1], [0], [0], [1], [0, 0, 1, 1], [], []>} : vector<8x128xbf16>, vector<128x128xbf16>, vector<8x128xf32> -> vector<8x128xf32>
    %315 = vector.broadcast %32 : vector<1x128xf32> to vector<8x128xf32>
    %316 = arith.addf %314, %315 : vector<8x128xf32>
    %c0_83 = arith.constant 0 : index
    %c0_84 = arith.constant 0 : index
    %317 = vector.load %arg2[%c0_83, %c0_84] : memref<8x1xi32, #tpu.memory_space<vmem>>, vector<8x1xi32>
    %318 = vector.broadcast %0 : vector<1x128xi32> to vector<8x128xi32>
    %319 = vector.broadcast %317 : vector<8x1xi32> to vector<8x128xi32>
    %320 = arith.cmpi eq, %318, %319 : vector<8x128xi32>
    %321 = arith.extui %320 : vector<8x128xi1> to vector<8x128xi32>
    %322 = arith.sitofp %321 : vector<8x128xi32> to vector<8x128xf32>
    %cst_85 = arith.constant -1.000000e+30 : f32
    %323 = vector.shape_cast %21 : vector<1x128xi1> to vector<1x128xi1>
    %324 = vector.broadcast %323 : vector<1x128xi1> to vector<8x128xi1>
    %325 = vector.broadcast %cst_85 : f32 to vector<8x128xf32>
    %326 = arith.select %324, %311, %325 : vector<8x128xi1>, vector<8x128xf32>
    %cst_86 = arith.constant dense<0xFF800000> : vector<8xf32>
    %327 = vector.multi_reduction <maximumf>, %326, %cst_86 [1] : vector<8x128xf32> to vector<8xf32>
    %328 = vector.shape_cast %327 : vector<8xf32> to vector<8x1xf32>
    %329 = vector.broadcast %328 : vector<8x1xf32> to vector<8x128xf32>
    %330 = arith.subf %326, %329 : vector<8x128xf32>
    %331 = math.exp %330 : vector<8x128xf32>
    %cst_87 = arith.constant dense<0.000000e+00> : vector<8xf32>
    %332 = vector.multi_reduction <add>, %331, %cst_87 [1] : vector<8x128xf32> to vector<8xf32>
    %333 = vector.shape_cast %332 : vector<8xf32> to vector<8x1xf32>
    %334 = math.log %333 : vector<8x1xf32>
    %335 = arith.addf %334, %328 : vector<8x1xf32>
    %336 = arith.mulf %322, %311 : vector<8x128xf32>
    %cst_88 = arith.constant dense<0.000000e+00> : vector<8xf32>
    %337 = vector.multi_reduction <add>, %336, %cst_88 [1] : vector<8x128xf32> to vector<8xf32>
    %338 = vector.shape_cast %337 : vector<8xf32> to vector<8x1xf32>
    %339 = arith.subf %335, %338 : vector<8x1xf32>
    %cst_89 = arith.constant 4.000000e-01 : f32
    %340 = vector.broadcast %cst_89 : f32 to vector<8x1xf32>
    %341 = arith.mulf %340, %339 : vector<8x1xf32>
    %cst_90 = arith.constant 5.000000e-01 : f32
    %342 = vector.broadcast %cst_90 : f32 to vector<8x128xf32>
    %343 = arith.mulf %311, %342 : vector<8x128xf32>
    %cst_91 = arith.constant -1.000000e+30 : f32
    %344 = vector.shape_cast %21 : vector<1x128xi1> to vector<1x128xi1>
    %345 = vector.broadcast %344 : vector<1x128xi1> to vector<8x128xi1>
    %346 = vector.broadcast %cst_91 : f32 to vector<8x128xf32>
    %347 = arith.select %345, %343, %346 : vector<8x128xi1>, vector<8x128xf32>
    %cst_92 = arith.constant 5.000000e-01 : f32
    %348 = vector.broadcast %cst_92 : f32 to vector<8x128xf32>
    %349 = arith.mulf %312, %348 : vector<8x128xf32>
    %cst_93 = arith.constant -1.000000e+30 : f32
    %350 = vector.shape_cast %21 : vector<1x128xi1> to vector<1x128xi1>
    %351 = vector.broadcast %350 : vector<1x128xi1> to vector<8x128xi1>
    %352 = vector.broadcast %cst_93 : f32 to vector<8x128xf32>
    %353 = arith.select %351, %349, %352 : vector<8x128xi1>, vector<8x128xf32>
    %cst_94 = arith.constant dense<0xFF800000> : vector<8xf32>
    %354 = vector.multi_reduction <maximumf>, %347, %cst_94 [1] : vector<8x128xf32> to vector<8xf32>
    %355 = vector.shape_cast %354 : vector<8xf32> to vector<8x1xf32>
    %356 = vector.broadcast %355 : vector<8x1xf32> to vector<8x128xf32>
    %357 = arith.subf %347, %356 : vector<8x128xf32>
    %358 = vector.broadcast %355 : vector<8x1xf32> to vector<8x128xf32>
    %359 = arith.subf %347, %358 : vector<8x128xf32>
    %360 = math.exp %359 : vector<8x128xf32>
    %cst_95 = arith.constant dense<0.000000e+00> : vector<8xf32>
    %361 = vector.multi_reduction <add>, %360, %cst_95 [1] : vector<8x128xf32> to vector<8xf32>
    %362 = vector.shape_cast %361 : vector<8xf32> to vector<8x1xf32>
    %363 = math.log %362 : vector<8x1xf32>
    %364 = vector.broadcast %363 : vector<8x1xf32> to vector<8x128xf32>
    %365 = arith.subf %357, %364 : vector<8x128xf32>
    %cst_96 = arith.constant dense<0xFF800000> : vector<8xf32>
    %366 = vector.multi_reduction <maximumf>, %353, %cst_96 [1] : vector<8x128xf32> to vector<8xf32>
    %367 = vector.shape_cast %366 : vector<8xf32> to vector<8x1xf32>
    %368 = vector.broadcast %367 : vector<8x1xf32> to vector<8x128xf32>
    %369 = arith.subf %353, %368 : vector<8x128xf32>
    %370 = vector.broadcast %367 : vector<8x1xf32> to vector<8x128xf32>
    %371 = arith.subf %353, %370 : vector<8x128xf32>
    %372 = math.exp %371 : vector<8x128xf32>
    %cst_97 = arith.constant dense<0.000000e+00> : vector<8xf32>
    %373 = vector.multi_reduction <add>, %372, %cst_97 [1] : vector<8x128xf32> to vector<8xf32>
    %374 = vector.shape_cast %373 : vector<8xf32> to vector<8x1xf32>
    %375 = math.log %374 : vector<8x1xf32>
    %376 = vector.broadcast %375 : vector<8x1xf32> to vector<8x128xf32>
    %377 = arith.subf %369, %376 : vector<8x128xf32>
    %378 = math.exp %377 : vector<8x128xf32>
    %379 = arith.subf %377, %365 : vector<8x128xf32>
    %380 = arith.mulf %378, %379 : vector<8x128xf32>
    %cst_98 = arith.constant 0.000000e+00 : f32
    %381 = vector.shape_cast %21 : vector<1x128xi1> to vector<1x128xi1>
    %382 = vector.broadcast %381 : vector<1x128xi1> to vector<8x128xi1>
    %383 = vector.broadcast %cst_98 : f32 to vector<8x128xf32>
    %384 = arith.select %382, %380, %383 : vector<8x128xi1>, vector<8x128xf32>
    %cst_99 = arith.constant dense<0.000000e+00> : vector<8xf32>
    %385 = vector.multi_reduction <add>, %384, %cst_99 [1] : vector<8x128xf32> to vector<8xf32>
    %386 = vector.shape_cast %385 : vector<8xf32> to vector<8x1xf32>
    %cst_100 = arith.constant 4.000000e+00 : f32
    %387 = vector.broadcast %cst_100 : f32 to vector<8x1xf32>
    %388 = arith.mulf %386, %387 : vector<8x1xf32>
    %cst_101 = arith.constant 6.000000e-01 : f32
    %389 = vector.broadcast %cst_101 : f32 to vector<8x1xf32>
    %390 = arith.mulf %389, %388 : vector<8x1xf32>
    %cst_102 = arith.constant 5.000000e-01 : f32
    %391 = vector.broadcast %cst_102 : f32 to vector<8x128xf32>
    %392 = arith.mulf %316, %391 : vector<8x128xf32>
    %cst_103 = arith.constant -1.000000e+30 : f32
    %393 = vector.shape_cast %21 : vector<1x128xi1> to vector<1x128xi1>
    %394 = vector.broadcast %393 : vector<1x128xi1> to vector<8x128xi1>
    %395 = vector.broadcast %cst_103 : f32 to vector<8x128xf32>
    %396 = arith.select %394, %392, %395 : vector<8x128xi1>, vector<8x128xf32>
    %cst_104 = arith.constant 5.000000e-01 : f32
    %397 = vector.broadcast %cst_104 : f32 to vector<8x128xf32>
    %398 = arith.mulf %312, %397 : vector<8x128xf32>
    %cst_105 = arith.constant -1.000000e+30 : f32
    %399 = vector.shape_cast %21 : vector<1x128xi1> to vector<1x128xi1>
    %400 = vector.broadcast %399 : vector<1x128xi1> to vector<8x128xi1>
    %401 = vector.broadcast %cst_105 : f32 to vector<8x128xf32>
    %402 = arith.select %400, %398, %401 : vector<8x128xi1>, vector<8x128xf32>
    %cst_106 = arith.constant dense<0xFF800000> : vector<8xf32>
    %403 = vector.multi_reduction <maximumf>, %396, %cst_106 [1] : vector<8x128xf32> to vector<8xf32>
    %404 = vector.shape_cast %403 : vector<8xf32> to vector<8x1xf32>
    %405 = vector.broadcast %404 : vector<8x1xf32> to vector<8x128xf32>
    %406 = arith.subf %396, %405 : vector<8x128xf32>
    %407 = vector.broadcast %404 : vector<8x1xf32> to vector<8x128xf32>
    %408 = arith.subf %396, %407 : vector<8x128xf32>
    %409 = math.exp %408 : vector<8x128xf32>
    %cst_107 = arith.constant dense<0.000000e+00> : vector<8xf32>
    %410 = vector.multi_reduction <add>, %409, %cst_107 [1] : vector<8x128xf32> to vector<8xf32>
    %411 = vector.shape_cast %410 : vector<8xf32> to vector<8x1xf32>
    %412 = math.log %411 : vector<8x1xf32>
    %413 = vector.broadcast %412 : vector<8x1xf32> to vector<8x128xf32>
    %414 = arith.subf %406, %413 : vector<8x128xf32>
    %cst_108 = arith.constant dense<0xFF800000> : vector<8xf32>
    %415 = vector.multi_reduction <maximumf>, %402, %cst_108 [1] : vector<8x128xf32> to vector<8xf32>
    %416 = vector.shape_cast %415 : vector<8xf32> to vector<8x1xf32>
    %417 = vector.broadcast %416 : vector<8x1xf32> to vector<8x128xf32>
    %418 = arith.subf %402, %417 : vector<8x128xf32>
    %419 = vector.broadcast %416 : vector<8x1xf32> to vector<8x128xf32>
    %420 = arith.subf %402, %419 : vector<8x128xf32>
    %421 = math.exp %420 : vector<8x128xf32>
    %cst_109 = arith.constant dense<0.000000e+00> : vector<8xf32>
    %422 = vector.multi_reduction <add>, %421, %cst_109 [1] : vector<8x128xf32> to vector<8xf32>
    %423 = vector.shape_cast %422 : vector<8xf32> to vector<8x1xf32>
    %424 = math.log %423 : vector<8x1xf32>
    %425 = vector.broadcast %424 : vector<8x1xf32> to vector<8x128xf32>
    %426 = arith.subf %418, %425 : vector<8x128xf32>
    %427 = math.exp %426 : vector<8x128xf32>
    %428 = arith.subf %426, %414 : vector<8x128xf32>
    %429 = arith.mulf %427, %428 : vector<8x128xf32>
    %cst_110 = arith.constant 0.000000e+00 : f32
    %430 = vector.shape_cast %21 : vector<1x128xi1> to vector<1x128xi1>
    %431 = vector.broadcast %430 : vector<1x128xi1> to vector<8x128xi1>
    %432 = vector.broadcast %cst_110 : f32 to vector<8x128xf32>
    %433 = arith.select %431, %429, %432 : vector<8x128xi1>, vector<8x128xf32>
    %cst_111 = arith.constant dense<0.000000e+00> : vector<8xf32>
    %434 = vector.multi_reduction <add>, %433, %cst_111 [1] : vector<8x128xf32> to vector<8xf32>
    %435 = vector.shape_cast %434 : vector<8xf32> to vector<8x1xf32>
    %cst_112 = arith.constant 4.000000e+00 : f32
    %436 = vector.broadcast %cst_112 : f32 to vector<8x1xf32>
    %437 = arith.mulf %435, %436 : vector<8x1xf32>
    %cst_113 = arith.constant 2.000000e+00 : f32
    %438 = vector.broadcast %cst_113 : f32 to vector<8x1xf32>
    %439 = arith.mulf %438, %437 : vector<8x1xf32>
    %cst_114 = arith.constant 5.000000e-01 : f32
    %440 = vector.broadcast %cst_114 : f32 to vector<8x1xf32>
    %441 = arith.mulf %440, %234 : vector<8x1xf32>
    %cst_115 = arith.constant 5.000000e-01 : f32
    %442 = vector.broadcast %cst_115 : f32 to vector<8x1xf32>
    %443 = arith.mulf %442, %292 : vector<8x1xf32>
    %c0_i32 = arith.constant 0 : i32
    %444 = vector.broadcast %c0_i32 : i32 to vector<1x128xi32>
    %445 = arith.cmpi eq, %0, %444 : vector<1x128xi32>
    %446 = arith.extui %445 : vector<1x128xi1> to vector<1x128xi32>
    %447 = arith.sitofp %446 : vector<1x128xi32> to vector<1x128xf32>
    %448 = vector.broadcast %341 : vector<8x1xf32> to vector<8x128xf32>
    %449 = vector.broadcast %447 : vector<1x128xf32> to vector<8x128xf32>
    %450 = arith.mulf %448, %449 : vector<8x128xf32>
    %c1_i32 = arith.constant 1 : i32
    %451 = vector.broadcast %c1_i32 : i32 to vector<1x128xi32>
    %452 = arith.cmpi eq, %0, %451 : vector<1x128xi32>
    %453 = arith.extui %452 : vector<1x128xi1> to vector<1x128xi32>
    %454 = arith.sitofp %453 : vector<1x128xi32> to vector<1x128xf32>
    %455 = vector.broadcast %390 : vector<8x1xf32> to vector<8x128xf32>
    %456 = vector.broadcast %454 : vector<1x128xf32> to vector<8x128xf32>
    %457 = arith.mulf %455, %456 : vector<8x128xf32>
    %458 = arith.addf %450, %457 : vector<8x128xf32>
    %c2_i32_116 = arith.constant 2 : i32
    %459 = vector.broadcast %c2_i32_116 : i32 to vector<1x128xi32>
    %460 = arith.cmpi eq, %0, %459 : vector<1x128xi32>
    %461 = arith.extui %460 : vector<1x128xi1> to vector<1x128xi32>
    %462 = arith.sitofp %461 : vector<1x128xi32> to vector<1x128xf32>
    %463 = vector.broadcast %441 : vector<8x1xf32> to vector<8x128xf32>
    %464 = vector.broadcast %462 : vector<1x128xf32> to vector<8x128xf32>
    %465 = arith.mulf %463, %464 : vector<8x128xf32>
    %466 = arith.addf %458, %465 : vector<8x128xf32>
    %c3_i32 = arith.constant 3 : i32
    %467 = vector.broadcast %c3_i32 : i32 to vector<1x128xi32>
    %468 = arith.cmpi eq, %0, %467 : vector<1x128xi32>
    %469 = arith.extui %468 : vector<1x128xi1> to vector<1x128xi32>
    %470 = arith.sitofp %469 : vector<1x128xi32> to vector<1x128xf32>
    %471 = vector.broadcast %443 : vector<8x1xf32> to vector<8x128xf32>
    %472 = vector.broadcast %470 : vector<1x128xf32> to vector<8x128xf32>
    %473 = arith.mulf %471, %472 : vector<8x128xf32>
    %474 = arith.addf %466, %473 : vector<8x128xf32>
    %c4_i32 = arith.constant 4 : i32
    %475 = vector.broadcast %c4_i32 : i32 to vector<1x128xi32>
    %476 = arith.cmpi eq, %0, %475 : vector<1x128xi32>
    %477 = arith.extui %476 : vector<1x128xi1> to vector<1x128xi32>
    %478 = arith.sitofp %477 : vector<1x128xi32> to vector<1x128xf32>
    %479 = vector.broadcast %439 : vector<8x1xf32> to vector<8x128xf32>
    %480 = vector.broadcast %478 : vector<1x128xf32> to vector<8x128xf32>
    %481 = arith.mulf %479, %480 : vector<8x128xf32>
    %482 = arith.addf %474, %481 : vector<8x128xf32>
    %483 = vector.broadcast %8 : vector<8x1xf32> to vector<8x128xf32>
    %484 = arith.mulf %482, %483 : vector<8x128xf32>
    %cst_117 = arith.constant dense<0.000000e+00> : vector<128xf32>
    %485 = vector.multi_reduction <add>, %484, %cst_117 [0] : vector<8x128xf32> to vector<128xf32>
    %486 = vector.shape_cast %485 : vector<128xf32> to vector<1x128xf32>
    %c0_118 = arith.constant 0 : index
    %c0_119 = arith.constant 0 : index
    %487 = vector.load %arg8[%c0_118, %c0_119] : memref<8x128xf32, #tpu.memory_space<vmem>>, vector<8x128xf32>
    tpu.vector_store %arg8[%c0_118, %c0_119], %311 {strides = array<i32>} : memref<8x128xf32, #tpu.memory_space<vmem>>, vector<8x128xf32>,
    %488 = vector.shape_cast %486 : vector<1x128xf32> to vector<1x1x128xf32>
    %489 = vector.shape_cast %488 : vector<1x1x128xf32> to vector<1x1x128xf32>
    %490 = vector.broadcast %489 : vector<1x1x128xf32> to vector<1x8x128xf32>
    %c0_120 = arith.constant 0 : index
    %c0_121 = arith.constant 0 : index
    %c0_122 = arith.constant 0 : index
    %491 = vector.load %arg9[%c0_120, %c0_121, %c0_122] : memref<1x8x128xf32, #tpu.memory_space<vmem>>, vector<1x8x128xf32>
    tpu.vector_store %arg9[%c0_120, %c0_121, %c0_122], %490 {strides = array<i32>} : memref<1x8x128xf32, #tpu.memory_space<vmem>>, vector<1x8x128xf32>,
    return
  }
  func.func @transform_0(%arg0: i32) -> (i32, i32) {
    %c0_i32 = arith.constant 0 : i32
    %c0_i32_0 = arith.constant 0 : i32
    return %arg0, %c0_i32 : i32, i32
  }
  func.func @transform_1(%arg0: i32) -> (i32, i32) {
    %c0_i32 = arith.constant 0 : i32
    %c0_i32_0 = arith.constant 0 : i32
    return %arg0, %c0_i32 : i32, i32
  }
  func.func @transform_2(%arg0: i32) -> (i32, i32) {
    %c0_i32 = arith.constant 0 : i32
    %c0_i32_0 = arith.constant 0 : i32
    %c0_i32_1 = arith.constant 0 : i32
    return %c0_i32, %c0_i32_0 : i32, i32
  }
  func.func @transform_3(%arg0: i32) -> (i32, i32) {
    %c0_i32 = arith.constant 0 : i32
    %c0_i32_0 = arith.constant 0 : i32
    %c0_i32_1 = arith.constant 0 : i32
    return %c0_i32, %c0_i32_0 : i32, i32
  }
  func.func @transform_4(%arg0: i32) -> (i32, i32) {
    %c0_i32 = arith.constant 0 : i32
    %c0_i32_0 = arith.constant 0 : i32
    %c0_i32_1 = arith.constant 0 : i32
    return %c0_i32, %c0_i32_0 : i32, i32
  }
  func.func @transform_5(%arg0: i32) -> (i32, i32, i32) {
    %c0_i32 = arith.constant 0 : i32
    %c0_i32_0 = arith.constant 0 : i32
    %c0_i32_1 = arith.constant 0 : i32
    %c0_i32_2 = arith.constant 0 : i32
    return %c0_i32, %c0_i32_0, %c0_i32_1 : i32, i32, i32
  }
  func.func @transform_6(%arg0: i32) -> (i32, i32) {
    %c0_i32 = arith.constant 0 : i32
    %c0_i32_0 = arith.constant 0 : i32
    %c0_i32_1 = arith.constant 0 : i32
    return %c0_i32, %c0_i32_0 : i32, i32
  }
  func.func @transform_7(%arg0: i32) -> (i32, i32) {
    %c0_i32 = arith.constant 0 : i32
    %c0_i32_0 = arith.constant 0 : i32
    return %arg0, %c0_i32 : i32, i32
  }
  func.func @transform_8(%arg0: i32) -> (i32, i32, i32) {
    %c0_i32 = arith.constant 0 : i32
    %c0_i32_0 = arith.constant 0 : i32
    %c0_i32_1 = arith.constant 0 : i32
    return %arg0, %c0_i32, %c0_i32_0 : i32, i32, i32
  }
}

</mosaic_0001>

<bundles_post_ra>
// kernel: feature_distiller_forward.1
= control target key start
LH: loop header
LB: loop body
LE: loop exit
PB: predicated region body
PF: predicated region fallthrough
CT: control target
= control target key end

     0   :  { %14 = vsyncpa [#allocation3], 0  ;;  %s2465_s27 = smov [#allocation2]   ;;  %s3135_s0 = inlined_call_operand.vmem [shape: bf16[8,1024], index: 0, kind: input, shape index: {}]   ;;  %s3136_s1 = inlined_call_operand.vmem [shape: s32[8,1], index: 1, kind: input, shape index: {}]   ;;  %s3137_s2 = inlined_call_operand.hbm [shape: bf16[1024,128], index: 2, kind: input, shape index: {}]   ;;  %s3138_s3 = inlined_call_operand.vmem [shape: bf16[128,128], index: 3, kind: input, shape index: {}]   ;;  %s3139_s4 = inlined_call_operand.vmem [shape: bf16[128,128], index: 4, kind: input, shape index: {}]   ;;  %s3140_s5 = inlined_call_operand.vmem [shape: bf16[2,128,128], index: 5, kind: input, shape index: {}]   ;;  %s3141_s6 = inlined_call_operand.vmem [shape: f32[8,128], index: 6, kind: input, shape index: {}]   ;;  %s3142_s7 = inlined_call_operand.vmem [shape: f32[8,128], index: 7, kind: output, shape index: {0}]   ;;  %s3143_s8 = inlined_call_operand.vmem [shape: f32[1,8,128], index: 8, kind: output, shape index: {1}]  }
   0x1   :  { %s24_s28 = sshll.u32 %s2465_s27, 4  ;;  %s2441_s9 = scalar_lea.hbm %s3137_s2, 8192  ;;  %s25_s28 = int_to_ptr.vmem [resolvable:$true] %s24_s28 }
   0x2   :  { %p2442_p0 = scmp.ne.s32.totalorder %s3137_s2, %s2441_s9  ;;  %p2445_p1 = scmp.lt.u32.totalorder %s2441_s9, %s3137_s2 }
   0x4   :  { %p2447_p2 = pnand %p2445_p1, %p2442_p0 }
   0x6   :  { %2450 = shalt.err (!%p2447_p2)
}
   0x7   :  { %s2451_s14 = scalar_lea.vmem %s25_s28, 8192  ;;  %p2456_p4 = scmp.lt.s32.totalorder %s25_s28, %s25_s28 }
   0x8   :  { %p2452_p3 = scmp.ne.s32.totalorder %s25_s28, %s2451_s14  ;;  %p2457_p5 = scmp.lt.s32.totalorder %s2451_s14, %s2451_s14 }
   0xa   :  { %p2458_p6 = por %p2457_p5, %p2456_p4 }
   0xc   :  { %p2459_p7 = pnand %p2458_p6, %p2452_p3 }
   0xe   :  { %2462 = shalt.err (!%p2459_p7)
}
   0xf   :  { %s2466_s15 = smov 64   ;;  %s2467_s16 = smov 4  }
  0x10   :  { %30 = dma.hbm_to_vmem [thread:$0]  %s3137_s2, 8192, %s25_s28, [#allocation3], %s2466_s15, %s2466_s15, %s2467_s16  }
  0x11   :  { %2463 = dma.done.wait [#allocation3], 8192  }
  0x12   :  { %2464 = vsyncadd [#allocation3], 4294959104  ;;  %v2279_v0 = vld [vmem:[#allocation2 + $0x40] sm:$0xff]   ;;  %v2283_v4 = vld [vmem:[#allocation2 + $0x48] sm:$0xff]   ;;  %vm2469_vm0 = vmmov 0  }
  0x13   :  { %v2280_v1 = vld [vmem:[#allocation2 + $0xc0] sm:$0xff]   ;;  %1922 = vmatprep.subr.bf16.mxu0 %v2279_v0  ;;  %v2284_v5 = vld [vmem:[#allocation2 + $0xc8] sm:$0xff]   ;;  %v2287_v8 = vld [vmem:[#allocation2 + $0x50] sm:$0xff]  }
  0x14   :  { %v2281_v2 = vld [vmem:[#allocation2] sm:$0xff]   ;;  %1944 = vmatprep.subr.bf16.mxu1 %v2280_v1  ;;  %v2285_v6 = vld [vmem:[#allocation2 + $0x8] sm:$0xff]   ;;  %v2288_v9 = vld [vmem:[#allocation2 + $0xd0] sm:$0xff]  }
  0x15   :  { %v2282_v3 = vld [vmem:[#allocation2 + $0x80] sm:$0xff]   ;;  %1923 = vmatpush3.bf16.msra.mxu0 %v2281_v2  ;;  %v2286_v7 = vld [vmem:[#allocation2 + $0x88] sm:$0xff]   ;;  %v2289_v10 = vld [vmem:[#allocation2 + $0x10] sm:$0xff]  }
  0x16   :  { %1945 = vmatpush3.bf16.msra.mxu1 %v2282_v3  ;;  %1924 = vmatprep.subr.bf16.mxu0 %v2283_v4  ;;  %v2290_v11 = vld [vmem:[#allocation2 + $0x90] sm:$0xff]   ;;  %v2291_v12 = vld [vmem:[#allocation2 + $0x58] sm:$0xff]   ;;  %v2295_v16 = vld [vmem:[#allocation2 + $0x60] sm:$0xff]  }
  0x17   :  { %1946 = vmatprep.subr.bf16.mxu1 %v2284_v5  ;;  %v2292_v13 = vld [vmem:[#allocation2 + $0xd8] sm:$0xff]   ;;  %v2296_v17 = vld [vmem:[#allocation2 + $0xe0] sm:$0xff]   ;;  %v2299_v20 = vld [vmem:[#allocation2 + $0x68] sm:$0xff]  }
  0x18   :  { %v2293_v14 = vld [vmem:[#allocation2 + $0x18] sm:$0xff]   ;;  %v2297_v18 = vld [vmem:[#allocation2 + $0x20] sm:$0xff]   ;;  %v2300_v21 = vld [vmem:[#allocation2 + $0xe8] sm:$0xff]  }
  0x19   :  { %1925 = vmatpush3.bf16.msra.mxu0 %v2285_v6  ;;  %v2294_v15 = vld [vmem:[#allocation2 + $0x98] sm:$0xff]   ;;  %v2298_v19 = vld [vmem:[#allocation2 + $0xa0] sm:$0xff]   ;;  %v2301_v22 = vld [vmem:[#allocation2 + $0x28] sm:$0xff]  }
  0x1a   :  { %1947 = vmatpush3.bf16.msra.mxu1 %v2286_v7  ;;  %1926 = vmatprep.subr.bf16.mxu0 %v2287_v8  ;;  %v2302_v23 = vld [vmem:[#allocation2 + $0xa8] sm:$0xff]   ;;  %v2303_v24 = vld [vmem:[#allocation2 + $0x70] sm:$0xff]   ;;  %v2307_v28 = vld [vmem:[#allocation2 + $0x78] sm:$0xff]  }
  0x1b   :  { %1948 = vmatprep.subr.bf16.mxu1 %v2288_v9  ;;  %v2304_v25 = vld [vmem:[#allocation2 + $0xf0] sm:$0xff]   ;;  %v2308_v29 = vld [vmem:[#allocation2 + $0xf8] sm:$0xff]   ;;  %v256_v32 = vld [vmem:[%s3135_s0] sm:$0xff] }
  0x1c   :  { %v2305_v26 = vld [vmem:[#allocation2 + $0x30] sm:$0xff]   ;;  %v2309_v30 = vld [vmem:[#allocation2 + $0x38] sm:$0xff]   ;;  %v257_v33 = vld [vmem:[%s3135_s0 + $0x8] sm:$0xff]  ;;  %v1812_v34 = vcombine.low %v256_v32, %v256_v32  ;;  %v1813_v35 = vcombine.high %v256_v32, %v256_v32 }
  0x1d   :  { %1927 = vmatpush3.bf16.msra.mxu0 %v2289_v10  ;;  %v2306_v27 = vld [vmem:[#allocation2 + $0xb0] sm:$0xff]   ;;  %v2310_v31 = vld [vmem:[#allocation2 + $0xb8] sm:$0xff]   ;;  %v1814_v36 = vcombine.low %v257_v33, %v257_v33  ;;  %v1815_v37 = vcombine.high %v257_v33, %v257_v33  ;;  %v2315_v38 = vld [vmem:[#allocation2 + $0x140] sm:$0xff]  }
  0x1e   :  { %1949 = vmatpush3.bf16.msra.mxu1 %v2290_v11  ;;  %1928 = vmatprep.subr.bf16.mxu0 %v2291_v12  ;;  %v2316_v39 = vld [vmem:[#allocation2 + $0x1c0] sm:$0xff]   ;;  %v2319_v42 = vld [vmem:[#allocation2 + $0x148] sm:$0xff]   ;;  %v2323_v46 = vld [vmem:[#allocation2 + $0x150] sm:$0xff]  }
  0x1f   :  { %1950 = vmatprep.subr.bf16.mxu1 %v2292_v13  ;;  %708 = vmatprep.mubr.bf16.mxu0 %v1813_v35  ;;  %v2317_v40 = vld [vmem:[#allocation2 + $0x100] sm:$0xff]   ;;  %v2320_v43 = vld [vmem:[#allocation2 + $0x1c8] sm:$0xff]   ;;  %v2324_v47 = vld [vmem:[#allocation2 + $0x1d0] sm:$0xff]   ;;  %v2468_v13 = vmov 0.0  }
  0x20   :  { %748 = vmatprep.mubr.bf16.mxu1 %v1815_v37  ;;  %v2318_v41 = vld [vmem:[#allocation2 + $0x180] sm:$0xff]   ;;  %v2321_v44 = vld [vmem:[#allocation2 + $0x108] sm:$0xff]   ;;  %v2325_v48 = vld [vmem:[#allocation2 + $0x110] sm:$0xff]  }
  0x21   :  { %1929 = vmatpush3.bf16.msra.mxu0 %v2293_v14  ;;  %v2322_v45 = vld [vmem:[#allocation2 + $0x188] sm:$0xff]   ;;  %v2326_v49 = vld [vmem:[#allocation2 + $0x190] sm:$0xff]   ;;  %v2327_v50 = vld [vmem:[#allocation2 + $0x158] sm:$0xff]  }
  0x22   :  { %1951 = vmatpush3.bf16.msra.mxu1 %v2294_v15  ;;  %1930 = vmatprep.subr.bf16.mxu0 %v2295_v16  ;;  %v2328_v51 = vld [vmem:[#allocation2 + $0x1d8] sm:$0xff]   ;;  %v2331_v54 = vld [vmem:[#allocation2 + $0x160] sm:$0xff]   ;;  %v2335_v58 = vld [vmem:[#allocation2 + $0x168] sm:$0xff]  }
  0x23   :  { %1952 = vmatprep.subr.bf16.mxu1 %v2296_v17  ;;  %v2329_v52 = vld [vmem:[#allocation2 + $0x118] sm:$0xff]   ;;  %v2332_v55 = vld [vmem:[#allocation2 + $0x1e0] sm:$0xff]   ;;  %v2336_v59 = vld [vmem:[#allocation2 + $0x1e8] sm:$0xff]  }
  0x24   :  { %v2330_v53 = vld [vmem:[#allocation2 + $0x198] sm:$0xff]   ;;  %v2333_v56 = vld [vmem:[#allocation2 + $0x120] sm:$0xff]   ;;  %v2337_v60 = vld [vmem:[#allocation2 + $0x128] sm:$0xff]  }
  0x25   :  { %1931 = vmatpush3.bf16.msra.mxu0 %v2297_v18  ;;  %v2334_v57 = vld [vmem:[#allocation2 + $0x1a0] sm:$0xff]   ;;  %v2338_v61 = vld [vmem:[#allocation2 + $0x1a8] sm:$0xff]   ;;  %v2339_v62 = vld [vmem:[#allocation2 + $0x170] sm:$0xff]  }
  0x26   :  { %1953 = vmatpush3.bf16.msra.mxu1 %v2298_v19  ;;  %1932 = vmatprep.subr.bf16.mxu0 %v2299_v20  ;;  %v2340_v63 = vld [vmem:[#allocation2 + $0x1f0] sm:$0xff]   ;;  %v2343_v2 = vld [vmem:[#allocation2 + $0x178] sm:$0xff]   ;;  %v2351_v12 = vld [vmem:[%s3140_s5] sm:$0xff]  }
  0x27   :  { %1954 = vmatprep.subr.bf16.mxu1 %v2300_v21  ;;  %v2341_v0 = vld [vmem:[#allocation2 + $0x130] sm:$0xff]   ;;  %v2344_v3 = vld [vmem:[#allocation2 + $0x1f8] sm:$0xff]   ;;  %v2352_v14 = vld [vmem:[%s3140_s5 + $0x8] sm:$0xff]   ;;  %v43_v21 = vlaneseq }
  0x28   :  { %v2342_v1 = vld [vmem:[#allocation2 + $0x1b0] sm:$0xff]   ;;  %v2345_v4 = vld [vmem:[#allocation2 + $0x138] sm:$0xff]   ;;  %v2355_v17 = vld [vmem:[%s3140_s5 + $0x20] sm:$0xff]  }
  0x29   :  { %1933 = vmatpush3.bf16.msra.mxu0 %v2301_v22  ;;  %v2346_v5 = vld [vmem:[#allocation2 + $0x1b8] sm:$0xff]   ;;  %v258_v6 = vld [vmem:[%s3135_s0 + $0x10] sm:$0xff]  ;;  %v2356_v18 = vld [vmem:[%s3140_s5 + $0x28] sm:$0xff]   ;;  %v2589_v22 = vshrl.u32 %v43_v21, 7 }
  0x2a   :  { %1955 = vmatpush3.bf16.msra.mxu1 %v2302_v23  ;;  %1934 = vmatprep.subr.bf16.mxu0 %v2303_v24  ;;  %v1816_v7 = vcombine.low %v258_v6, %v258_v6  ;;  %v1817_v8 = vcombine.high %v258_v6, %v258_v6  ;;  %v259_v9 = vld [vmem:[%s3135_s0 + $0x18] sm:$0xff]  ;;  %v2353_v15 = vld [vmem:[%s3140_s5 + $0x10] sm:$0xff]   ;;  %v2595_v24 = vld [vmem:[%s3141_s6] sm:$0xff] }
  0x2b   :  { %1956 = vmatprep.subr.bf16.mxu1 %v2304_v25  ;;  %v1818_v10 = vcombine.low %v259_v9, %v259_v9  ;;  %v1819_v11 = vcombine.high %v259_v9, %v259_v9  ;;  %v2354_v16 = vld [vmem:[%s3140_s5 + $0x18] sm:$0xff]   ;;  %v2357_v19 = vld [vmem:[%s3140_s5 + $0x30] sm:$0xff]   ;;  %v262_v23 = vsub.s32 0, %v2589_v22 }
  0x2c   :  { %v2358_v20 = vld [vmem:[%s3140_s5 + $0x38] sm:$0xff]  }
  0x2d   :  { %1935 = vmatpush3.bf16.msra.mxu0 %v2305_v26 }
  0x2e   :  { %1957 = vmatpush3.bf16.msra.mxu1 %v2306_v27  ;;  %1936 = vmatprep.subr.bf16.mxu0 %v2307_v28  ;;  %v263_v27 = vrot.slane %v2595_v24, %v262_v23 }
  0x2f   :  { %1958 = vmatprep.subr.bf16.mxu1 %v2308_v29 }
  0x31   :  { %1937 = vmatpush3.bf16.msra.mxu0 %v2309_v30 }
  0x32   :  { %1959 = vmatpush3.bf16.msra.mxu1 %v2310_v31  ;;  %1966 = vmatprep.subr.bf16.mxu0 %v2315_v38 }
  0x33   :  { %1988 = vmatprep.subr.bf16.mxu1 %v2316_v39 }
  0x34   :  { %709 = vmatmul.mubr.bf16.vlgmr.msra.gmra.mrb[0].mxu0 %v1812_v34 }
  0x35   :  { %749 = vmatmul.mubr.bf16.vlgmr.msra.gmra.mrb[0].mxu1 %v1814_v36  ;;  %1967 = vmatpush3.bf16.msra.mxu0 %v2317_v40 }
  0x36   :  { %1989 = vmatpush3.bf16.msra.mxu1 %v2318_v41  ;;  %1968 = vmatprep.subr.bf16.mxu0 %v2319_v42 }
  0x37   :  { %1990 = vmatprep.subr.bf16.mxu1 %v2320_v43  ;;  %788 = vmatprep.mubr.bf16.mxu0 %v1817_v8 }
  0x38   :  { %828 = vmatprep.mubr.bf16.mxu1 %v1819_v11 }
  0x39   :  { %1969 = vmatpush3.bf16.msra.mxu0 %v2321_v44 }
  0x3a   :  { %1991 = vmatpush3.bf16.msra.mxu1 %v2322_v45  ;;  %1970 = vmatprep.subr.bf16.mxu0 %v2323_v46 }
  0x3b   :  { %1992 = vmatprep.subr.bf16.mxu1 %v2324_v47 }
  0x3d   :  { %1971 = vmatpush3.bf16.msra.mxu0 %v2325_v48 }
  0x3e   :  { %1993 = vmatpush3.bf16.msra.mxu1 %v2326_v49  ;;  %1972 = vmatprep.subr.bf16.mxu0 %v2327_v50 }
  0x3f   :  { %1994 = vmatprep.subr.bf16.mxu1 %v2328_v51  ;;  %v2603_v51 = vld [vmem:[%s3138_s3] sm:$0xff]  }
  0x41   :  { %1973 = vmatpush3.bf16.msra.mxu0 %v2329_v52 }
  0x42   :  { %1995 = vmatpush3.bf16.msra.mxu1 %v2330_v53  ;;  %1974 = vmatprep.subr.bf16.mxu0 %v2331_v54  ;;  %v2611_v53 = vld [vmem:[%s3138_s3 + $0x8] sm:$0xff]   ;;  %v2620_v54 = vld [vmem:[%s3138_s3 + $0x10] sm:$0xff]  }
  0x43   :  { %1996 = vmatprep.subr.bf16.mxu1 %v2332_v55  ;;  %v2627_v55 = vld [vmem:[%s3138_s3 + $0x18] sm:$0xff]  }
  0x45   :  { %1975 = vmatpush3.bf16.msra.mxu0 %v2333_v56  ;;  %v2634_v56 = vld [vmem:[%s3138_s3 + $0x20] sm:$0xff]  }
  0x46   :  { %1997 = vmatpush3.bf16.msra.mxu1 %v2334_v57  ;;  %1976 = vmatprep.subr.bf16.mxu0 %v2335_v58  ;;  %v2641_v57 = vld [vmem:[%s3138_s3 + $0x28] sm:$0xff]   ;;  %v2648_v58 = vld [vmem:[%s3138_s3 + $0x30] sm:$0xff]  }
  0x47   :  { %1998 = vmatprep.subr.bf16.mxu1 %v2336_v59  ;;  %v2655_v59 = vld [vmem:[%s3138_s3 + $0x38] sm:$0xff]  }
  0x49   :  { %1977 = vmatpush3.bf16.msra.mxu0 %v2337_v60  ;;  %v2665_v60 = vld [vmem:[%s3140_s5 + $0x40] sm:$0xff]  }
  0x4a   :  { %1999 = vmatpush3.bf16.msra.mxu1 %v2338_v61  ;;  %1978 = vmatprep.subr.bf16.mxu0 %v2339_v62  ;;  %v2672_v61 = vld [vmem:[%s3140_s5 + $0x48] sm:$0xff]   ;;  %v2679_v62 = vld [vmem:[%s3140_s5 + $0x50] sm:$0xff]  }
  0x4b   :  { %2000 = vmatprep.subr.bf16.mxu1 %v2340_v63  ;;  %v2686_v63 = vld [vmem:[%s3140_s5 + $0x58] sm:$0xff]  }
  0x4d   :  { %1979 = vmatpush3.bf16.msra.mxu0 %v2341_v0  ;;  %v2693_v0 = vld [vmem:[%s3140_s5 + $0x60] sm:$0xff]  }
  0x4e   :  { %2001 = vmatpush3.bf16.msra.mxu1 %v2342_v1  ;;  %1980 = vmatprep.subr.bf16.mxu0 %v2343_v2  ;;  %v2700_v1 = vld [vmem:[%s3140_s5 + $0x68] sm:$0xff]   ;;  %v2707_v2 = vld [vmem:[%s3140_s5 + $0x70] sm:$0xff]  }
  0x4f   :  { %2002 = vmatprep.subr.bf16.mxu1 %v2344_v3  ;;  %v2714_v3 = vld [vmem:[%s3140_s5 + $0x78] sm:$0xff]  }
  0x51   :  { %1981 = vmatpush3.bf16.msra.mxu0 %v2345_v4  ;;  %v840_v4 = vsub.s32 3, %v2589_v22 }
  0x52   :  { %2003 = vmatpush3.bf16.msra.mxu1 %v2346_v5  ;;  %2091 = vmatprep.subr.bf16.mxu0 %v2468_v13 }
  0x53   :  { %2111 = vmatprep.subr.bf16.mxu1 %v2468_v13  ;;  %v2720_v5 = vrot.slane %v2595_v24, %v840_v4 }
  0x54   :  { %789 = vmatmul.mubr.bf16.vlgmr.msra.gmra.mrb[4].mxu0 %v1816_v7 }
  0x55   :  { %829 = vmatmul.mubr.bf16.vlgmr.msra.gmra.mrb[4].mxu1 %v1818_v10  ;;  %2092 = vmatpush3.bf16.msra.mxu0 %v2351_v12 }
  0x56   :  { %2112 = vmatpush3.bf16.msra.mxu1 %v2351_v12  ;;  %2093 = vmatprep.subr.bf16.mxu0 %v2468_v13  ;;  %v1097_v12 = vsub.s32 1, %v2589_v22 }
  0x57   :  { %2113 = vmatprep.subr.bf16.mxu1 %v2468_v13  ;;  %2107 = vmatprep.mubr.msk.bf16.mxu0 %vm2469_vm0, %v2468_v13 }
  0x58   :  { %2127 = vmatprep.mubr.msk.bf16.mxu1 %vm2469_vm0, %v2468_v13 }
  0x59   :  { %2094 = vmatpush3.bf16.msra.mxu0 %v2352_v14 }
  0x5a   :  { %2114 = vmatpush3.bf16.msra.mxu1 %v2352_v14  ;;  %2095 = vmatprep.subr.bf16.mxu0 %v2468_v13  ;;  %v1098_v14 = vrot.slane %v2595_v24, %v1097_v12 }
  0x5b   :  { %2115 = vmatprep.subr.bf16.mxu1 %v2468_v13 }
  0x5d   :  { %2096 = vmatpush3.bf16.msra.mxu0 %v2353_v15 }
  0x5e   :  { %2116 = vmatpush3.bf16.msra.mxu1 %v2353_v15  ;;  %2097 = vmatprep.subr.bf16.mxu0 %v2468_v13 }
  0x5f   :  { %2117 = vmatprep.subr.bf16.mxu1 %v2468_v13 }
  0x61   :  { %2098 = vmatpush3.bf16.msra.mxu0 %v2354_v16 }
  0x62   :  { %2118 = vmatpush3.bf16.msra.mxu1 %v2354_v16  ;;  %2099 = vmatprep.subr.bf16.mxu0 %v2468_v13 }
  0x63   :  { %2119 = vmatprep.subr.bf16.mxu1 %v2468_v13 }
  0x65   :  { %2100 = vmatpush3.bf16.msra.mxu0 %v2355_v17 }
  0x66   :  { %2120 = vmatpush3.bf16.msra.mxu1 %v2355_v17  ;;  %2101 = vmatprep.subr.bf16.mxu0 %v2468_v13 }
  0x67   :  { %2121 = vmatprep.subr.bf16.mxu1 %v2468_v13 }
  0x69   :  { %2102 = vmatpush3.bf16.msra.mxu0 %v2356_v18 }
  0x6a   :  { %2122 = vmatpush3.bf16.msra.mxu1 %v2356_v18  ;;  %2103 = vmatprep.subr.bf16.mxu0 %v2468_v13 }
  0x6b   :  { %2123 = vmatprep.subr.bf16.mxu1 %v2468_v13 }
  0x6d   :  { %2104 = vmatpush3.bf16.msra.mxu0 %v2357_v19 }
  0x6e   :  { %2124 = vmatpush3.bf16.msra.mxu1 %v2357_v19  ;;  %2105 = vmatprep.subr.bf16.mxu0 %v2468_v13 }
  0x6f   :  { %2125 = vmatprep.subr.bf16.mxu1 %v2468_v13 }
  0x71   :  { %2106 = vmatpush3.bf16.msra.mxu0 %v2358_v20 }
  0x72   :  { %2126 = vmatpush3.bf16.msra.mxu1 %v2358_v20  ;;  %2131 = vmatprep.subr.bf16.mxu0 %v2468_v13 }
  0x73   :  { %2151 = vmatprep.subr.bf16.mxu1 %v2468_v13 }
 0x107   :  { %v1938_v25 = vpop.f32.mrb[0].mxu0 }
 0x108   :  { %v1960_v26 = vpop.f32.mrb[0].mxu1  ;;  %v1939_v28 = vpop.f32.mrb[1].mxu0 }
 0x109   :  { %v1961_v29 = vpop.f32.mrb[1].mxu1  ;;  %v1940_v30 = vadd.f32 %v1939_v28, %v1938_v25  ;;  %v1941_v32 = vpop.f32.mrb[2].mxu0  ;;  %v2764_v25 = vand.u32 127, %v43_v21 }
 0x10a   :  { %v1962_v31 = vadd.f32 %v1961_v29, %v1960_v26  ;;  %v1963_v33 = vpop.f32.mrb[2].mxu1  ;;  %v1942_v34 = vpop.f32.mrb[3].mxu0  ;;  %v2794_v29 = vld [vmem:[%s3139_s4 + $0x8] sm:$0xff]   ;;  %v2379_v32 = vld [vmem:[%s3139_s4 + $0x20] sm:$0xff]  }
 0x10b   :  { %v1964_v35 = vpop.f32.mrb[3].mxu1  ;;  %v711_v36 = vadd.f32 %v1940_v30, %v263_v27  ;;  %vm56_vm1 = vcmp.ge.s32.totalorder %v2764_v25, 32  ;;  %vm57_vm2 = vcmp.lt.s32.totalorder %v2764_v25, 96  ;;  %v2785_v27 = vld [vmem:[%s3139_s4] sm:$0xff]   ;;  %v2803_v30 = vld [vmem:[%s3139_s4 + $0x10] sm:$0xff]   ;;  %v2380_v33 = vld [vmem:[%s3139_s4 + $0x28] sm:$0xff]  }
 0x10c   :  { %vm58_vm3 = vmand %vm56_vm1, %vm57_vm2  ;;  %v2381_v34 = vld [vmem:[%s3139_s4 + $0x30] sm:$0xff]   ;;  %v2826_v35 = vld [vmem:[%s3139_s4 + $0x38] sm:$0xff]   ;;  %vm61_vm4 = vcmp.lt.s32.totalorder %v2764_v25, 10  ;;  %vm53_vm5 = vcmp.lt.s32.totalorder %v2764_v25, 32 }
 0x10d   :  { %v751_v37 = vadd.f32 %v1962_v31, %v711_v36  ;;  %v2773_v26 = vsel %vm58_vm3, 1.0, %v2468_v13  ;;  %v2378_v31 = vld [vmem:[%s3139_s4 + $0x18] sm:$0xff]  }
 0x127   :  { %v1982_v38 = vpop.f32.mrb[4].mxu0 }
 0x128   :  { %v2004_v39 = vpop.f32.mrb[4].mxu1  ;;  %v1983_v40 = vpop.f32.mrb[5].mxu0 }
 0x129   :  { %v2005_v41 = vpop.f32.mrb[5].mxu1  ;;  %v1984_v42 = vadd.f32 %v1983_v40, %v1982_v38  ;;  %v1985_v44 = vpop.f32.mrb[6].mxu0  ;;  %v1191_v40 = vsub.s32 4, %v2589_v22 }
 0x12a   :  { %v2006_v43 = vadd.f32 %v2005_v41, %v2004_v39  ;;  %v2007_v45 = vpop.f32.mrb[6].mxu1  ;;  %v1986_v46 = vpop.f32.mrb[7].mxu0 }
 0x12b   :  { %v2008_v47 = vpop.f32.mrb[7].mxu1  ;;  %v791_v48 = vadd.f32 %v1984_v42, %v751_v37  ;;  %v2834_v41 = vrot.slane %v2595_v24, %v1191_v40 }
 0x12d   :  { %v831_v49 = vadd.f32 %v2006_v43, %v791_v48  ;;  %v1449_v48 = vmul.f32 %v2773_v26, %v2595_v24 }
 0x12f   :  { %v2598_v50 = vmax.f32 %v831_v49, 0.0  ;;  %v1453_v49 = vrot.slane %v1449_v48, %v1097_v12 }
 0x131   :  { %v837_v52 = vpack.c.bf16 %v2598_v50, %v2598_v50 }
 0x133   :  { %2108 = vmatmul.mubr.bf16.vlgmr.msra.gmra.mrb[8].mxu0 %v837_v52 }
 0x134   :  { %2132 = vmatpush3.bf16.msra.mxu0 %v2603_v51  ;;  %2147 = vmatprep.mubr.msk.bf16.mxu0 %vm2469_vm0, %v2468_v13 }
 0x135   :  { %2133 = vmatprep.subr.bf16.mxu0 %v2468_v13 }
 0x138   :  { %2134 = vmatpush3.bf16.msra.mxu0 %v2611_v53 }
 0x139   :  { %2135 = vmatprep.subr.bf16.mxu0 %v2468_v13 }
 0x13c   :  { %2136 = vmatpush3.bf16.msra.mxu0 %v2620_v54 }
 0x13d   :  { %2137 = vmatprep.subr.bf16.mxu0 %v2468_v13 }
 0x140   :  { %2138 = vmatpush3.bf16.msra.mxu0 %v2627_v55 }
 0x141   :  { %2139 = vmatprep.subr.bf16.mxu0 %v2468_v13 }
 0x144   :  { %2140 = vmatpush3.bf16.msra.mxu0 %v2634_v56 }
 0x145   :  { %2141 = vmatprep.subr.bf16.mxu0 %v2468_v13 }
 0x148   :  { %2142 = vmatpush3.bf16.msra.mxu0 %v2641_v57 }
 0x149   :  { %2143 = vmatprep.subr.bf16.mxu0 %v2468_v13 }
 0x14c   :  { %2144 = vmatpush3.bf16.msra.mxu0 %v2648_v58 }
 0x14d   :  { %2145 = vmatprep.subr.bf16.mxu0 %v2468_v13 }
 0x150   :  { %2146 = vmatpush3.bf16.msra.mxu0 %v2655_v59 }
 0x151   :  { %2171 = vmatprep.subr.bf16.mxu0 %v2468_v13 }
 0x153   :  { %2148 = vmatmul.mubr.bf16.vlgmr.msra.gmra.mrb[12].mxu0 %v837_v52 }
 0x154   :  { %2187 = vmatprep.mubr.msk.bf16.mxu0 %vm2469_vm0, %v2468_v13  ;;  %2172 = vmatpush3.bf16.msra.mxu0 %v2665_v60 }
 0x155   :  { %2173 = vmatprep.subr.bf16.mxu0 %v2468_v13 }
 0x158   :  { %2174 = vmatpush3.bf16.msra.mxu0 %v2672_v61 }
 0x159   :  { %2175 = vmatprep.subr.bf16.mxu0 %v2468_v13 }
 0x15c   :  { %2176 = vmatpush3.bf16.msra.mxu0 %v2679_v62 }
 0x15d   :  { %2177 = vmatprep.subr.bf16.mxu0 %v2468_v13 }
 0x160   :  { %2178 = vmatpush3.bf16.msra.mxu0 %v2686_v63 }
 0x161   :  { %2179 = vmatprep.subr.bf16.mxu0 %v2468_v13 }
 0x164   :  { %2180 = vmatpush3.bf16.msra.mxu0 %v2693_v0 }
 0x165   :  { %2181 = vmatprep.subr.bf16.mxu0 %v2468_v13 }
 0x168   :  { %2182 = vmatpush3.bf16.msra.mxu0 %v2700_v1 }
 0x169   :  { %2183 = vmatprep.subr.bf16.mxu0 %v2468_v13 }
 0x16c   :  { %2184 = vmatpush3.bf16.msra.mxu0 %v2707_v2 }
 0x16d   :  { %2185 = vmatprep.subr.bf16.mxu0 %v2468_v13 }
 0x170   :  { %2186 = vmatpush3.bf16.msra.mxu0 %v2714_v3 }
 0x171   :  { %2211 = vmatprep.subr.bf16.mxu0 %v2468_v13 }
 0x206   :  { %v924_v6 = vpop.f32.mrb[8].mxu0 }
 0x207   :  { %v2723_v7 = vadd.f32 %v924_v6, %v2720_v5  ;;  %v2109_v8 = vpop.f32.mrb[9].mxu0 }
 0x208   :  { %v927_v9 = vpop.f32.mrb[10].mxu0 }
 0x209   :  { %v930_v10 = vpack.c.bf16 %v2723_v7, %v2723_v7  ;;  %v2110_v11 = vpop.f32.mrb[11].mxu0  ;;  %v2778_v21 = vmul.f32 %v2773_v26, %v2723_v7 }
 0x20b   :  { %2128 = vmatmul.mubr.bf16.vlgmr.msra.gmra.mrb[8].mxu1 %v930_v10  ;;  %v1448_v28 = vpack.c.bf16 %v2778_v21, %v2778_v21 }
 0x20c   :  { %2152 = vmatpush3.bf16.msra.mxu1 %v2665_v60  ;;  %2167 = vmatprep.mubr.msk.bf16.mxu1 %vm2469_vm0, %v2468_v13 }
 0x20d   :  { %2153 = vmatprep.subr.bf16.mxu1 %v2468_v13 }
 0x210   :  { %2154 = vmatpush3.bf16.msra.mxu1 %v2672_v61 }
 0x211   :  { %2155 = vmatprep.subr.bf16.mxu1 %v2468_v13 }
 0x214   :  { %2156 = vmatpush3.bf16.msra.mxu1 %v2679_v62 }
 0x215   :  { %2157 = vmatprep.subr.bf16.mxu1 %v2468_v13 }
 0x218   :  { %2158 = vmatpush3.bf16.msra.mxu1 %v2686_v63 }
 0x219   :  { %2159 = vmatprep.subr.bf16.mxu1 %v2468_v13 }
 0x21c   :  { %2160 = vmatpush3.bf16.msra.mxu1 %v2693_v0 }
 0x21d   :  { %2161 = vmatprep.subr.bf16.mxu1 %v2468_v13 }
 0x220   :  { %2162 = vmatpush3.bf16.msra.mxu1 %v2700_v1 }
 0x221   :  { %2163 = vmatprep.subr.bf16.mxu1 %v2468_v13 }
 0x224   :  { %2164 = vmatpush3.bf16.msra.mxu1 %v2707_v2 }
 0x225   :  { %2165 = vmatprep.subr.bf16.mxu1 %v2468_v13 }
 0x226   :  { %v1181_v15 = vpop.f32.mrb[12].mxu0 }
 0x227   :  { %v1182_v16 = vadd.f32 %v1181_v15, %v1098_v14  ;;  %v2149_v17 = vpop.f32.mrb[13].mxu0  ;;  %v1027_v15 = vmul.f32 %v2778_v21, %v2778_v21 }
 0x228   :  { %v1184_v18 = vpop.f32.mrb[14].mxu0  ;;  %2166 = vmatpush3.bf16.msra.mxu1 %v2714_v3 }
 0x229   :  { %v2748_v19 = vmax.f32 %v1182_v16, 0.0  ;;  %v2150_v20 = vpop.f32.mrb[15].mxu0  ;;  %2191 = vmatprep.subr.bf16.mxu1 %v2468_v13 }
 0x22b   :  { %v1188_v23 = vpack.c.bf16 %v2748_v19, %v2748_v19 }
 0x22d   :  { %2168 = vmatmul.mubr.bf16.vlgmr.msra.gmra.mrb[12].mxu1 %v1188_v23 }
 0x22e   :  { %2192 = vmatpush3.bf16.msra.mxu1 %v2603_v51  ;;  %2207 = vmatprep.mubr.msk.bf16.mxu1 %vm2469_vm0, %v2468_v13 }
 0x22f   :  { %2193 = vmatprep.subr.bf16.mxu1 %v2468_v13 }
 0x232   :  { %2194 = vmatpush3.bf16.msra.mxu1 %v2611_v53 }
 0x233   :  { %2195 = vmatprep.subr.bf16.mxu1 %v2468_v13 }
 0x236   :  { %2196 = vmatpush3.bf16.msra.mxu1 %v2620_v54 }
 0x237   :  { %2197 = vmatprep.subr.bf16.mxu1 %v2468_v13 }
 0x23a   :  { %2198 = vmatpush3.bf16.msra.mxu1 %v2627_v55 }
 0x23b   :  { %2199 = vmatprep.subr.bf16.mxu1 %v2468_v13 }
 0x23e   :  { %2200 = vmatpush3.bf16.msra.mxu1 %v2634_v56 }
 0x23f   :  { %2201 = vmatprep.subr.bf16.mxu1 %v2468_v13 }
 0x242   :  { %2202 = vmatpush3.bf16.msra.mxu1 %v2641_v57 }
 0x243   :  { %2203 = vmatprep.subr.bf16.mxu1 %v2468_v13 }
 0x246   :  { %2204 = vmatpush3.bf16.msra.mxu1 %v2648_v58  ;;  %v1539_v58 = vsub.s32 2, %v2589_v22 }
 0x247   :  { %2205 = vmatprep.subr.bf16.mxu1 %v2468_v13 }
 0x24a   :  { %2206 = vmatpush3.bf16.msra.mxu1 %v2655_v59  ;;  %v2875_v59 = vrot.slane %v2595_v24, %v1539_v58 }
 0x24b   :  { %2231 = vmatprep.subr.bf16.mxu1 %v2468_v13 }
 0x24d   :  { %2208 = vmatmul.mubr.bf16.vlgmr.msra.gmra.mrb[16].mxu1 %v1448_v28 }
 0x24e   :  { %2232 = vmatpush3.bf16.msra.mxu1 %v2785_v27  ;;  %2247 = vmatprep.mubr.msk.bf16.mxu1 %vm2469_vm0, %v2468_v13 }
 0x24f   :  { %2233 = vmatprep.subr.bf16.mxu1 %v2468_v13 }
 0x252   :  { %2234 = vmatpush3.bf16.msra.mxu1 %v2794_v29 }
 0x253   :  { %2235 = vmatprep.subr.bf16.mxu1 %v2468_v13 }
 0x256   :  { %2236 = vmatpush3.bf16.msra.mxu1 %v2803_v30 }
 0x257   :  { %2237 = vmatprep.subr.bf16.mxu1 %v2468_v13 }
 0x25a   :  { %2238 = vmatpush3.bf16.msra.mxu1 %v2378_v31 }
 0x25b   :  { %2239 = vmatprep.subr.bf16.mxu1 %v2468_v13 }
 0x25e   :  { %2240 = vmatpush3.bf16.msra.mxu1 %v2379_v32 }
 0x25f   :  { %2241 = vmatprep.subr.bf16.mxu1 %v2468_v13 }
 0x262   :  { %2242 = vmatpush3.bf16.msra.mxu1 %v2380_v33 }
 0x263   :  { %2243 = vmatprep.subr.bf16.mxu1 %v2468_v13 }
 0x266   :  { %2244 = vmatpush3.bf16.msra.mxu1 %v2381_v34 }
 0x267   :  { %2245 = vmatprep.subr.bf16.mxu1 %v2468_v13 }
 0x26a   :  { %2246 = vmatpush3.bf16.msra.mxu1 %v2826_v35 }
 0x26d   :  { %2248 = vmatmul.mubr.bf16.vlgmr.msra.gmra.mrb[20].mxu1 %v1188_v23  ;;  %v2932_v23 = vmul.f32 %v2773_v26, %v2748_v19 }
 0x2de   :  { %v2830_v36 = vpop.f32.mrb[8].mxu1 }
 0x2df   :  { %v2129_v37 = vpop.f32.mrb[9].mxu1  ;;  %v966_v11 = vadd.f32 %v2830_v36, %v2720_v5 }
 0x2e0   :  { %v968_v38 = vpop.f32.mrb[10].mxu1 }
 0x2e1   :  { %v2130_v39 = vpop.f32.mrb[11].mxu1  ;;  %v2912_v14 = vmul.f32 %v2773_v26, %v966_v11 }
 0x300   :  { %v1275_v42 = vpop.f32.mrb[12].mxu1 }
 0x301   :  { %v2837_v43 = vadd.f32 %v1275_v42, %v2834_v41  ;;  %v2169_v44 = vpop.f32.mrb[13].mxu1 }
 0x302   :  { %v1278_v45 = vpop.f32.mrb[14].mxu1 }
 0x303   :  { %v1281_v46 = vpack.c.bf16 %v2837_v43, %v2837_v43  ;;  %v2170_v47 = vpop.f32.mrb[15].mxu1  ;;  %v1360_v28 = vmul.f32 %v2773_v26, %v2837_v43 }
 0x305   :  { %2188 = vmatmul.mubr.bf16.vlgmr.msra.gmra.mrb[16].mxu0 %v1281_v46 }
 0x306   :  { %2212 = vmatpush3.bf16.msra.mxu0 %v2665_v60  ;;  %2227 = vmatprep.mubr.msk.bf16.mxu0 %vm2469_vm0, %v2468_v13 }
 0x307   :  { %2213 = vmatprep.subr.bf16.mxu0 %v2468_v13 }
 0x30a   :  { %2214 = vmatpush3.bf16.msra.mxu0 %v2672_v61 }
 0x30b   :  { %2215 = vmatprep.subr.bf16.mxu0 %v2468_v13 }
 0x30e   :  { %2216 = vmatpush3.bf16.msra.mxu0 %v2679_v62 }
 0x30f   :  { %2217 = vmatprep.subr.bf16.mxu0 %v2468_v13 }
 0x312   :  { %2218 = vmatpush3.bf16.msra.mxu0 %v2686_v63 }
 0x313   :  { %2219 = vmatprep.subr.bf16.mxu0 %v2468_v13 }
 0x316   :  { %2220 = vmatpush3.bf16.msra.mxu0 %v2693_v0 }
 0x317   :  { %2221 = vmatprep.subr.bf16.mxu0 %v2468_v13 }
 0x31a   :  { %2222 = vmatpush3.bf16.msra.mxu0 %v2700_v1 }
 0x31b   :  { %2223 = vmatprep.subr.bf16.mxu0 %v2468_v13 }
 0x31e   :  { %2224 = vmatpush3.bf16.msra.mxu0 %v2707_v2  ;;  %v1794_v2 = vsel %vm53_vm5, 1.0, %v2468_v13 }
 0x31f   :  { %2225 = vmatprep.subr.bf16.mxu0 %v2468_v13  ;;  %v2899_v6 = vmul.f32 %v1794_v2, %v2598_v50  ;;  %v972_v9 = vmul.f32 %v1794_v2, %v2723_v7  ;;  %v2916_v16 = vmul.f32 %v1794_v2, %v966_v11  ;;  %v1053_v7 = vmul.f32 %v2912_v14, %v2912_v14 }
 0x320   :  { %v1488_v51 = vpop.f32.mrb[16].mxu1  ;;  %v2921_v17 = vmul.f32 %v1794_v2, %v2748_v19  ;;  %v2926_v18 = vmul.f32 %v1794_v2, %v2837_v43  ;;  %v2954_v43 = vmul.f32 %v2773_v26, %v2598_v50  ;;  %v1366_v50 = vmul.f32 %v1360_v28, %v2932_v23 }
 0x321   :  { %v1489_v52 = vadd.f32 %v1488_v51, %v1453_v49  ;;  %v2209_v53 = vpop.f32.mrb[17].mxu1  ;;  %v981_v10 = vmul.f32 %v2899_v6, %v2899_v6  ;;  %v991_v12 = vmul.f32 %v972_v9, %v972_v9  ;;  %v1078_v5 = vmul.f32 %v2916_v16, %v2916_v16 }
 0x322   :  { %v1491_v54 = vpop.f32.mrb[18].mxu1  ;;  %2226 = vmatpush3.bf16.msra.mxu0 %v2714_v3  ;;  %v1332_v20 = vmul.f32 %v2921_v17, %v2921_v17  ;;  %v978_v39 = vmul.f32 %v972_v9, %v2899_v6  ;;  %v973_v40 = vsub.f32 %v2899_v6, %v972_v9  ;;  %v1050_v44 = vmul.f32 %v2912_v14, %v2954_v43 }
 0x323   :  { %v1494_v55 = vmax.f32 %v1489_v52, 0.0  ;;  %v2210_v56 = vpop.f32.mrb[19].mxu1  ;;  %2251 = vmatprep.subr.bf16.mxu0 %v2468_v13  ;;  %v1329_v45 = vmul.f32 %v2926_v18, %v2921_v17  ;;  %v1070_v46 = vsub.f32 %v2899_v6, %v2916_v16 }
 0x324   :  { %v974_v42 = vmul.f32 %v973_v40, %v973_v40 }
 0x325   :  { %v1495_v57 = vpack.c.bf16 %v1494_v55, %v1494_v55  ;;  %v1071_v47 = vmul.f32 %v1070_v46, %v1070_v46 }
 0x327   :  { %2228 = vmatmul.mubr.bf16.vlgmr.msra.gmra.mrb[20].mxu0 %v1495_v57 }
 0x328   :  { %2252 = vmatpush3.bf16.msra.mxu0 %v2785_v27  ;;  %2267 = vmatprep.mubr.msk.bf16.mxu0 %vm2469_vm0, %v2468_v13  ;;  %v1342_v27 = vmul.f32 %v2926_v18, %v2926_v18 }
 0x329   :  { %2253 = vmatprep.subr.bf16.mxu0 %v2468_v13 }
 0x32c   :  { %2254 = vmatpush3.bf16.msra.mxu0 %v2794_v29  ;;  %v1369_v29 = vmul.f32 %v2932_v23, %v2932_v23 }
 0x32d   :  { %2255 = vmatprep.subr.bf16.mxu0 %v2468_v13 }
 0x330   :  { %2256 = vmatpush3.bf16.msra.mxu0 %v2803_v30 }
 0x331   :  { %2257 = vmatprep.subr.bf16.mxu0 %v2468_v13 }
 0x334   :  { %2258 = vmatpush3.bf16.msra.mxu0 %v2378_v31 }
 0x335   :  { %2259 = vmatprep.subr.bf16.mxu0 %v2468_v13 }
 0x338   :  { %2260 = vmatpush3.bf16.msra.mxu0 %v2379_v32 }
 0x339   :  { %2261 = vmatprep.subr.bf16.mxu0 %v2468_v13 }
 0x33c   :  { %2262 = vmatpush3.bf16.msra.mxu0 %v2380_v33 }
 0x33d   :  { %2263 = vmatprep.subr.bf16.mxu0 %v2468_v13 }
 0x340   :  { %v1623_v60 = vpop.f32.mrb[20].mxu1  ;;  %2264 = vmatpush3.bf16.msra.mxu0 %v2381_v34 }
 0x341   :  { %v2879_v61 = vadd.f32 %v1623_v60, %v2875_v59  ;;  %v2249_v62 = vpop.f32.mrb[21].mxu1  ;;  %2265 = vmatprep.subr.bf16.mxu0 %v2468_v13 }
 0x342   :  { %v1626_v63 = vpop.f32.mrb[22].mxu1 }
 0x343   :  { %1782 = vst [vmem:[%s3142_s7] sm:$0xff] %v2879_v61  ;;  %1629 = vrot.lane.b32.xlu0 %v2879_v61, %s2466_s15  ;;  %v2250_v24 = vpop.f32.mrb[23].mxu1  ;;  %v1697_v0 = vmul.f32 0.5, %v2879_v61 }
 0x344   :  { %2266 = vmatpush3.bf16.msra.mxu0 %v2826_v35  ;;  %v1379_v35 = vmul.f32 %v1360_v28, %v1360_v28 }
 0x345   :  { %v2893_v1 = vsel %vm61_vm4, %v1697_v0, -1e+30 }
 0x346   :  { %1701 = vmax.xlane.f32.xlu1 %v2893_v1 }
 0x3b5   :  { %v1630_v3 = vpop.permute.xlu0 %1629 }
 0x3b6   :  { %v1699_v4 = vmul.f32 0.5, %v1630_v3 }
 0x3b8   :  { %v2903_v8 = vsel %vm61_vm4, %v1699_v4, -1e+30 }
 0x3b9   :  { %1711 = vmax.xlane.f32.xlu0 %v2903_v8 }
 0x3bd   :  { %982 = vadd.xlane.f32.xlu0 %v981_v10 }
 0x3c1   :  { %992 = vadd.xlane.f32.xlu0 %v991_v12 }
 0x3c5   :  { %1028 = vadd.xlane.f32.xlu0 %v1027_v15 }
 0x3c9   :  { %1054 = vadd.xlane.f32.xlu0 %v1053_v7 }
 0x3cd   :  { %1079 = vadd.xlane.f32.xlu0 %v1078_v5 }
 0x3d1   :  { %1333 = vadd.xlane.f32.xlu0 %v1332_v20 }
 0x3d3   :  { %v1702_v62 = vpop.xlane.xlu1 %1701 }
 0x3d4   :  { %v2969_v63 = vsub.f32 %v2893_v1, %v1702_v62  ;;  %v1681_v1 = vsel %vm61_vm4, %v2879_v61, -1e+30 }
 0x3d5   :  { %1343 = vadd.xlane.f32.xlu0 %v1342_v27  ;;  %v1672_v27 = vld [vmem:[%s3136_s1] sm:$0xff] }
 0x3d6   :  { %v1704_v4 = vmul.f32 1.442695, %v2969_v63 }
 0x3d8   :  { %v1316_v30 = vpop.f32.mrb[16].mxu0 }
 0x3d9   :  { %1370 = vadd.xlane.f32.xlu0 %v1369_v29  ;;  %v1317_v31 = vadd.f32 %v1316_v30, %v2834_v41  ;;  %v2189_v32 = vpop.f32.mrb[17].mxu0 }
 0x3da   :  { %v1319_v33 = vpop.f32.mrb[18].mxu0  ;;  %v1017_v32 = vmul.f32 %v2954_v43, %v2954_v43 }
 0x3db   :  { %v2942_v34 = vmul.f32 %v2773_v26, %v1317_v31  ;;  %v2190_v19 = vpop.f32.mrb[19].mxu0  ;;  %v2946_v37 = vmul.f32 %v1794_v2, %v1317_v31  ;;  %v1361_v26 = vsub.f32 %v2932_v23, %v1360_v28 }
 0x3dc   :  { %v1014_v19 = vmul.f32 %v2778_v21, %v2954_v43 }
 0x3dd   :  { %1380 = vadd.xlane.f32.xlu0 %v1379_v35  ;;  %v1405_v36 = vmul.f32 %v2942_v34, %v2942_v34  ;;  %v1431_v38 = vmul.f32 %v2946_v37, %v2946_v37  ;;  %v1362_v56 = vmul.f32 %v1361_v26, %v1361_v26  ;;  %v1428_v57 = vmul.f32 %v2946_v37, %v2921_v17 }
 0x3de   :  { %v1009_v35 = vsub.f32 %v2954_v43, %v2778_v21  ;;  %v1324_v21 = vsub.f32 %v2921_v17, %v2926_v18 }
 0x3e0   :  { %v1010_v40 = vmul.f32 %v1009_v35, %v1009_v35 }
 0x3e1   :  { %1406 = vadd.xlane.f32.xlu0 %v1405_v36 }
 0x3e5   :  { %1432 = vadd.xlane.f32.xlu0 %v1431_v38 }
 0x3e9   :  { %979 = vadd.xlane.f32.xlu0 %v978_v39 }
 0x3ed   :  { %975 = vadd.xlane.f32.xlu0 %v974_v42 }
 0x3f1   :  { %1051 = vadd.xlane.f32.xlu0 %v1050_v44  ;;  %v1075_v44 = vmul.f32 %v2916_v16, %v2899_v6  ;;  %v1397_v6 = vsub.f32 %v2932_v23, %v2942_v34 }
 0x3f3   :  { %v1398_v16 = vmul.f32 %v1397_v6, %v1397_v6 }
 0x3f5   :  { %1330 = vadd.xlane.f32.xlu0 %v1329_v45  ;;  %v1045_v45 = vsub.f32 %v2954_v43, %v2912_v14  ;;  %v1423_v43 = vsub.f32 %v2921_v17, %v2946_v37 }
 0x3f9   :  { %1072 = vadd.xlane.f32.xlu0 %v1071_v47  ;;  %v1046_v47 = vmul.f32 %v1045_v45, %v1045_v45 }
 0x3fa   :  { %v1530_v48 = vpop.f32.mrb[20].mxu0 }
 0x3fb   :  { %v1531_v49 = vadd.f32 %v1530_v48, %v2834_v41  ;;  %v2229_v51 = vpop.f32.mrb[21].mxu0 }
 0x3fc   :  { %v1533_v52 = vpop.f32.mrb[22].mxu0 }
 0x3fd   :  { %v1536_v53 = vmul.f32 %v1794_v2, %v1531_v49  ;;  %1367 = vadd.xlane.f32.xlu0 %v1366_v50  ;;  %v2230_v54 = vpop.f32.mrb[23].mxu0  ;;  %v1325_v49 = vmul.f32 %v1324_v21, %v1324_v21  ;;  %v1402_v50 = vmul.f32 %v2942_v34, %v2932_v23  ;;  %v1424_v52 = vmul.f32 %v1423_v43, %v1423_v43 }
 0x3ff   :  { %v1631_v55 = vpack.c.bf16 %v1536_v53, %v1536_v53 }
 0x401   :  { %1363 = vadd.xlane.f32.xlu0 %v1362_v56  ;;  %2268 = vmatmul.mubr.bf16.vlgmr.msra.gmra.mrb[24].mxu0 %v1631_v55 }
 0x405   :  { %1429 = vadd.xlane.f32.xlu0 %v1428_v57 }
 0x446   :  { %v1712_v58 = vpop.xlane.xlu0 %1711 }
 0x447   :  { %v1713_v41 = vsub.f32 %v2903_v8, %v1712_v58 }
 0x449   :  { %v1714_v60 = vmul.f32 1.442695, %v1713_v41 }
 0x44a   :  { %v983_v62 = vpop.xlane.xlu0 %982 }
 0x44b   :  { %2383 = vpow2.f32 %v1714_v60  ;;  %vm986_vm8 = vcmp.eq.f32.partialorder %v983_v62, inf  ;;  %vm988_vm10 = vcmp.eq.f32.partialorder %v983_v62, 0.0 }
 0x44c   :  { %2385 = vpow2.f32 %v1704_v4 }
 0x455   :  { %v2384_v8 = vpop.eup %2383 }
 0x456   :  { %v2386_v12 = vpop.eup %2385 }
 0x4d4   :  { %v1666_v24 = vpop.f32.mrb[24].mxu0 }
 0x4d5   :  { %v1667_v0 = vadd.f32 %v1666_v24, %v2875_v59  ;;  %v2269_v2 = vpop.f32.mrb[25].mxu0  ;;  %v2470_v59 = vmov 0  }
 0x4d6   :  { %v1669_v3 = vpop.f32.mrb[26].mxu0  ;;  %2277 = vset.pattern.permute.xlu1 %v2470_v59  ;;  %2278 = vset.pattern.permute.xlu0 %v2470_v59 }
 0x4d7   :  { %v1730_v9 = vmul.f32 0.5, %v1667_v0  ;;  %v2270_v10 = vpop.f32.mrb[27].mxu0 }
 0x4d9   :  { %v1731_v11 = vsel %vm61_vm4, %v1730_v9, -1e+30 }
 0x4da   :  { %1732 = vmax.xlane.f32.xlu1 %v1731_v11 }
 0x4de   :  { %1716 = vadd.xlane.f32.xlu1 %v2384_v8 }
 0x4e2   :  { %1682 = vmax.xlane.f32.xlu1 %v1681_v1 }
 0x4e6   :  { %1706 = vadd.xlane.f32.xlu1 %v2386_v12 }
 0x567   :  { %v1733_v15 = vpop.xlane.xlu1 %1732 }
 0x568   :  { %v2978_v7 = vsub.f32 %v1731_v11, %v1733_v15 }
 0x56a   :  { %v1735_v5 = vmul.f32 1.442695, %v2978_v7 }
 0x56b   :  { %v1717_v28 = vpop.xlane.xlu1 %1716 }
 0x56c   :  { %2387 = vpow2.f32 %v1735_v5 }
 0x56f   :  { %v2984_v29 = vpop.xlane.xlu1 %1682 }
 0x570   :  { %v1684_v30 = vsub.f32 %v1681_v1, %v2984_v29 }
 0x572   :  { %v1685_v31 = vmul.f32 1.442695, %v1684_v30 }
 0x573   :  { %v1707_v38 = vpop.xlane.xlu1 %1706 }
 0x574   :  { %2389 = vpow2.f32 %v1685_v31 }
 0x575   :  { %2391 = vlog2.f32 %v1717_v28 }
 0x576   :  { %v2388_v20 = vpop.eup %2387  ;;  %2393 = vlog2.f32 %v1707_v38 }
 0x577   :  { %1737 = vadd.xlane.f32.xlu1 %v2388_v20 }
 0x57e   :  { %v2390_v33 = vpop.eup %2389 }
 0x57f   :  { %v2392_v36 = vpop.eup %2391 }
 0x580   :  { %v1719_v39 = vmul.f32 0.6931472, %v2392_v36  ;;  %v2394_v48 = vpop.eup %2393 }
 0x581   :  { %v1709_v51 = vmul.f32 0.6931472, %v2394_v48 }
 0x582   :  { %v1720_v42 = vsub.f32 %v1713_v41, %v1719_v39 }
 0x583   :  { %v1710_v14 = vsub.f32 %v2969_v63, %v1709_v51  ;;  %v993_v63 = vpop.xlane.xlu0 %992 }
 0x584   :  { %v1721_v46 = vmul.f32 1.442695, %v1720_v42  ;;  %vm996_vm7 = vcmp.eq.f32.partialorder %v993_v63, inf  ;;  %v999_v36 = vand.u32 2147483648, %v993_v63  ;;  %vm998_vm11 = vcmp.eq.f32.partialorder %v993_v63, 0.0 }
 0x585   :  { %v1723_v26 = vsub.f32 %v1720_v42, %v1710_v14 }
 0x586   :  { %2395 = vpow2.f32 %v1721_v46 }
 0x587   :  { %v3014_v24 = vpop.xlane.xlu0 %1028 }
 0x588   :  { %1674 = vperm.xlu1 %2277, %v1672_v27   ;;  %vm1032_vm12 = vcmp.eq.f32.partialorder %v3014_v24, inf  ;;  %v1035_v51 = vand.u32 2147483648, %v3014_v24  ;;  %vm1034_vm14 = vcmp.eq.f32.partialorder %v3014_v24, 0.0 }
 0x58b   :  { %v3016_v0 = vpop.xlane.xlu0 %1054 }
 0x58c   :  { %vm1058_vm15 = vcmp.eq.f32.partialorder %v3016_v0, inf  ;;  %vm1060_vm0 = vcmp.eq.f32.partialorder %v3016_v0, 0.0 }
 0x58f   :  { %v3018_v2 = vpop.xlane.xlu0 %1079 }
 0x590   :  { %v2396_v18 = vpop.eup %2395  ;;  %vm1083_vm1 = vcmp.eq.f32.partialorder %v3018_v2, inf  ;;  %vm1085_vm2 = vcmp.eq.f32.partialorder %v3018_v2, 0.0 }
 0x591   :  { %v1724_v53 = vmul.f32 %v2396_v18, %v1723_v26 }
 0x593   :  { %v1725_v54 = vsel %vm61_vm4, %v1724_v53, 0.0 }
 0x5ac   :  { %1018 = vadd.xlane.f32.xlu1 %v1017_v32 }
 0x5b0   :  { %1687 = vadd.xlane.f32.xlu1 %v2390_v33 }
 0x5b4   :  { %1015 = vadd.xlane.f32.xlu1 %v1014_v19 }
 0x5b8   :  { %1011 = vadd.xlane.f32.xlu1 %v1010_v40  ;;  %v989_v40 = vand.u32 2147483648, %v983_v62 }
 0x5bc   :  { %1076 = vadd.xlane.f32.xlu1 %v1075_v44 }
 0x5c0   :  { %1047 = vadd.xlane.f32.xlu1 %v1046_v47 }
 0x5c4   :  { %1326 = vadd.xlane.f32.xlu1 %v1325_v49 }
 0x5c8   :  { %1403 = vadd.xlane.f32.xlu1 %v1402_v50 }
 0x5cc   :  { %1399 = vadd.xlane.f32.xlu1 %v1398_v16 }
 0x5d0   :  { %1425 = vadd.xlane.f32.xlu1 %v1424_v52 }
 0x5d4   :  { %1726 = vadd.xlane.f32.xlu1 %v1725_v54 }
 0x604   :  { %v1738_v55 = vpop.xlane.xlu1 %1737 }
 0x605   :  { %2397 = vlog2.f32 %v1738_v55 }
 0x606   :  { %2399 = vrsqrt.f32 %v993_v63 }
 0x607   :  { %2401 = vrsqrt.f32 %v983_v62 }
 0x608   :  { %v1675_v23 = vpop.permute.xlu1 %1674 }
 0x609   :  { %vm1676_vm6 = vcmp.eq.s32.totalorder %v2764_v25, %v1675_v23 }
 0x60a   :  { %v1916_v34 = vsel %vm1676_vm6, 1.0, %v2468_v13 }
 0x60b   :  { %v1692_v56 = vmul.f32 %v1916_v34, %v2879_v61  ;;  %v3020_v61 = vpop.xlane.xlu0 %1333 }
 0x60c   :  { %vm1337_vm3 = vcmp.eq.f32.partialorder %v3020_v61, inf }
 0x60d   :  { %1693 = vadd.xlane.f32.xlu0 %v1692_v56 }
 0x60f   :  { %v2398_v17 = vpop.eup %2397  ;;  %v3022_v3 = vpop.xlane.xlu0 %1343 }
 0x610   :  { %v1740_v37 = vmul.f32 0.6931472, %v2398_v17  ;;  %v2400_v12 = vpop.eup %2399  ;;  %v1086_v17 = vand.u32 2147483648, %v3018_v2  ;;  %vm1347_vm5 = vcmp.eq.f32.partialorder %v3022_v3, inf  ;;  %vm1349_vm6 = vcmp.eq.f32.partialorder %v3022_v3, 0.0 }
 0x611   :  { %v2402_v59 = vpop.eup %2401  ;;  %v995_v5 = vmul.f32 %v2400_v12, %v993_v63 }
 0x612   :  { %v1741_v57 = vsub.f32 %v2978_v7, %v1740_v37  ;;  %v985_v28 = vmul.f32 %v2402_v59, %v983_v62 }
 0x613   :  { %v3024_v4 = vpop.xlane.xlu0 %1370  ;;  %v997_v32 = vsel %vm996_vm7, %v993_v63, %v995_v5 }
 0x614   :  { %v1742_v58 = vsub.f32 %v1720_v42, %v1741_v57  ;;  %v987_v38 = vsel %vm986_vm8, %v983_v62, %v985_v28  ;;  %v1000_v42 = vsel %vm998_vm11, %v999_v36, %v997_v32  ;;  %vm1374_vm7 = vcmp.eq.f32.partialorder %v3024_v4, inf }
 0x615   :  { %v990_v50 = vsel %vm988_vm10, %v989_v40, %v987_v38 }
 0x616   :  { %v1743_v41 = vmul.f32 %v2396_v18, %v1742_v58  ;;  %v3060_v14 = vmul.f32 %v1000_v42, %v990_v50  ;;  %v1061_v18 = vand.u32 2147483648, %v3016_v0  ;;  %v1340_v58 = vand.u32 2147483648, %v3020_v61 }
 0x617   :  { %v3026_v9 = vpop.xlane.xlu0 %1380 }
 0x618   :  { %v1744_v60 = vsel %vm61_vm4, %v1743_v41, 0.0  ;;  %vm1339_vm4 = vcmp.eq.f32.partialorder %v3020_v61, 0.0  ;;  %v1350_v41 = vand.u32 2147483648, %v3022_v3  ;;  %vm1384_vm8 = vcmp.eq.f32.partialorder %v3026_v9, inf }
 0x619   :  { %1745 = vadd.xlane.f32.xlu0 %v1744_v60  ;;  %v1002_v60 = vmax.f32 %v3060_v14, 1e-08  ;;  %v1387_v32 = vand.u32 2147483648, %v3026_v9 }
 0x61b   :  { %v3028_v11 = vpop.xlane.xlu0 %1406 }
 0x61c   :  { %vm1410_vm10 = vcmp.eq.f32.partialorder %v3028_v11, inf }
 0x61f   :  { %v3035_v1 = vpop.xlane.xlu0 %1432 }
 0x620   :  { %vm1436_vm11 = vcmp.eq.f32.partialorder %v3035_v1, inf }
 0x623   :  { %v3042_v27 = vpop.xlane.xlu0 %979 }
 0x627   :  { %v3051_v44 = vpop.xlane.xlu0 %975 }
 0x62b   :  { %v3074_v37 = vpop.xlane.xlu0 %1051 }
 0x639   :  { %v1019_v10 = vpop.xlane.xlu1 %1018 }
 0x63a   :  { %2403 = vrsqrt.f32 %v1019_v10  ;;  %vm1022_vm9 = vcmp.eq.f32.partialorder %v1019_v10, inf  ;;  %v1025_v45 = vand.u32 2147483648, %v1019_v10  ;;  %vm1024_vm13 = vcmp.eq.f32.partialorder %v1019_v10, 0.0 }
 0x63b   :  { %2405 = vrsqrt.f32 %v3014_v24 }
 0x63c   :  { %2407 = vrsqrt.f32 %v3016_v0 }
 0x63d   :  { %v3031_v8 = vpop.xlane.xlu1 %1687  ;;  %2409 = vrsqrt.f32 %v3018_v2 }
 0x63e   :  { %2411 = vrsqrt.f32 %v3022_v3 }
 0x63f   :  { %2413 = vrsqrt.f32 %v3020_v61 }
 0x640   :  { %2415 = vrsqrt.f32 %v3024_v4 }
 0x641   :  { %v3038_v15 = vpop.xlane.xlu1 %1015  ;;  %2417 = vrsqrt.f32 %v3026_v9 }
 0x642   :  { %2419 = vrsqrt.f32 %v3028_v11 }
 0x643   :  { %2421 = vrsqrt.f32 %v3035_v1 }
 0x644   :  { %v2404_v7 = vpop.eup %2403 }
 0x645   :  { %v2406_v20 = vpop.eup %2405  ;;  %v1021_v30 = vmul.f32 %v2404_v7, %v1019_v10  ;;  %v3048_v19 = vpop.xlane.xlu1 %1011 }
 0x646   :  { %v2408_v31 = vpop.eup %2407  ;;  %v1031_v33 = vmul.f32 %v2406_v20, %v3014_v24 }
 0x647   :  { %v2410_v35 = vpop.eup %2409  ;;  %v1023_v39 = vsel %vm1022_vm9, %v1019_v10, %v1021_v30  ;;  %v1057_v21 = vmul.f32 %v2408_v31, %v3016_v0  ;;  %vm1386_vm9 = vcmp.eq.f32.partialorder %v3026_v9, 0.0 }
 0x648   :  { %v2412_v46 = vpop.eup %2411  ;;  %v1033_v47 = vsel %vm1032_vm12, %v3014_v24, %v1031_v33  ;;  %v1082_v48 = vmul.f32 %v2410_v35, %v3018_v2  ;;  %v1026_v6 = vsel %vm1024_vm13, %v1025_v45, %v1023_v39  ;;  %v1331_v33 = vpop.xlane.xlu0 %1330  ;;  %v1413_v39 = vand.u32 2147483648, %v3028_v11 }
 0x649   :  { %v2414_v49 = vpop.eup %2413  ;;  %v3062_v16 = vpop.xlane.xlu1 %1076  ;;  %v1346_v26 = vmul.f32 %v2412_v46, %v3022_v3  ;;  %v1036_v52 = vsel %vm1034_vm14, %v1035_v51, %v1033_v47  ;;  %v1059_v54 = vsel %vm1058_vm15, %v3016_v0, %v1057_v21  ;;  %v1377_v45 = vand.u32 2147483648, %v3024_v4 }
 0x64a   :  { %v2416_v43 = vpop.eup %2415  ;;  %v1084_v55 = vsel %vm1083_vm1, %v3018_v2, %v1082_v48  ;;  %v1336_v23 = vmul.f32 %v2414_v49, %v3020_v61  ;;  %v1037_v34 = vmul.f32 %v1036_v52, %v1026_v6  ;;  %v1062_v62 = vsel %vm1060_vm0, %v1061_v18, %v1059_v54 }
 0x64b   :  { %v2418_v53 = vpop.eup %2417  ;;  %v1348_v63 = vsel %vm1347_vm5, %v3022_v3, %v1346_v26  ;;  %v1087_v2 = vsel %vm1085_vm2, %v1086_v17, %v1084_v55  ;;  %v1063_v7 = vmul.f32 %v1062_v62, %v1026_v6  ;;  %v1373_v20 = vmul.f32 %v2416_v43, %v3024_v4 }
 0x64c   :  { %v2420_v56 = vpop.eup %2419  ;;  %v1383_v24 = vmul.f32 %v2418_v53, %v3026_v9  ;;  %v1338_v10 = vsel %vm1337_vm3, %v3020_v61, %v1336_v23  ;;  %v1038_v59 = vmax.f32 %v1037_v34, 1e-08  ;;  %v1351_v28 = vsel %vm1349_vm6, %v1350_v41, %v1348_v63  ;;  %v1073_v6 = vpop.xlane.xlu0 %1072 }
 0x64d   :  { %v2422_v57 = vpop.eup %2421  ;;  %v1409_v12 = vmul.f32 %v2420_v56, %v3028_v11  ;;  %v3086_v5 = vpop.xlane.xlu1 %1047  ;;  %v1088_v30 = vmul.f32 %v1087_v2, %v990_v50  ;;  %v1341_v3 = vsel %vm1339_vm4, %v1340_v58, %v1338_v10  ;;  %v1064_v36 = vmax.f32 %v1063_v7, 1e-08 }
 0x64e   :  { %v1435_v0 = vmul.f32 %v2422_v57, %v3035_v1  ;;  %v1385_v31 = vsel %vm1384_vm8, %v3026_v9, %v1383_v24  ;;  %2423 = vrcp.f32 %v1038_v59  ;;  %v1375_v38 = vsel %vm1374_vm7, %v3024_v4, %v1373_v20 }
 0x64f   :  { %v1411_v35 = vsel %vm1410_vm10, %v3028_v11, %v1409_v12  ;;  %v1352_v42 = vmul.f32 %v1351_v28, %v1341_v3  ;;  %vm1412_vm12 = vcmp.eq.f32.partialorder %v3028_v11, 0.0  ;;  %v1439_v61 = vand.u32 2147483648, %v3035_v1 }
 0x650   :  { %v1437_v40 = vsel %vm1436_vm11, %v3035_v1, %v1435_v0  ;;  %v1388_v46 = vsel %vm1386_vm9, %v1387_v32, %v1385_v31  ;;  %vm1376_vm13 = vcmp.eq.f32.partialorder %v3024_v4, 0.0  ;;  %vm1438_vm14 = vcmp.eq.f32.partialorder %v3035_v1, 0.0  ;;  %v1368_v4 = vpop.xlane.xlu0 %1367 }
 0x651   :  { %v1327_v47 = vpop.xlane.xlu1 %1326  ;;  %v1414_v21 = vsel %vm1412_vm12, %v1413_v39, %v1411_v35  ;;  %v1378_v48 = vsel %vm1376_vm13, %v1377_v45, %v1375_v38  ;;  %v1440_v49 = vsel %vm1438_vm14, %v1439_v61, %v1437_v40  ;;  %2425 = vrcp.f32 %v1064_v36 }
 0x652   :  { %v1089_v51 = vmax.f32 %v1088_v30, 1e-08  ;;  %v1353_v50 = vmax.f32 %v1352_v42, 1e-08  ;;  %v1389_v14 = vmul.f32 %v1388_v46, %v1378_v48  ;;  %2427 = vrcp.f32 %v1002_v60 }
 0x653   :  { %v1415_v11 = vmul.f32 %v1414_v21, %v1378_v48  ;;  %v1441_v43 = vmul.f32 %v1440_v49, %v1341_v3  ;;  %v977_v60 = vmul.f32 0.03125, %v3051_v44  ;;  %v1328_v0 = vmul.f32 0.03125, %v1327_v47 }
 0x654   :  { %2429 = vrcp.f32 %v1089_v51  ;;  %v1390_v9 = vmax.f32 %v1389_v14, 1e-08  ;;  %v1364_v56 = vpop.xlane.xlu0 %1363  ;;  %v1074_v32 = vmul.f32 0.03125, %v1073_v6  ;;  %vm1751_vm15 = vcmp.eq.s32.totalorder %v2764_v25, 0 }
 0x655   :  { %v1404_v18 = vpop.xlane.xlu1 %1403  ;;  %2431 = vrcp.f32 %v1353_v50  ;;  %v1416_v52 = vmax.f32 %v1415_v11, 1e-08  ;;  %v1442_v53 = vmax.f32 %v1441_v43, 1e-08  ;;  %v1365_v38 = vmul.f32 0.015625, %v1364_v56 }
 0x656   :  { %2433 = vlog2.f32 %v3031_v8  ;;  %v1013_v8 = vmul.f32 0.015625, %v3048_v19  ;;  %vm1755_vm0 = vcmp.eq.s32.totalorder %v2764_v25, 1  ;;  %v1917_v43 = vsel %vm1751_vm15, 1.0, %v2468_v13 }
 0x657   :  { %2435 = vrcp.f32 %v1390_v9  ;;  %vm1760_vm1 = vcmp.eq.s32.totalorder %v2764_v25, 2  ;;  %vm1765_vm2 = vcmp.eq.s32.totalorder %v2764_v25, 3  ;;  %vm1770_vm3 = vcmp.eq.s32.totalorder %v2764_v25, 4 }
 0x658   :  { %v2424_v26 = vpop.eup %2423  ;;  %2437 = vrcp.f32 %v1416_v52  ;;  %v1430_v7 = vpop.xlane.xlu0 %1429  ;;  %vm50_vm4 = vcmp.lt.s32.totalorder %v2589_v22, 2 }
 0x659   :  { %v1040_v1 = vmul.f32 %v2424_v26, %v3038_v15  ;;  %v1400_v55 = vpop.xlane.xlu1 %1399  ;;  %2439 = vrcp.f32 %v1442_v53 }
 0x65a   :  { %v1401_v42 = vmul.f32 0.015625, %v1400_v55  ;;  %v1919_v55 = vsel %vm1760_vm1, 1.0, %v2468_v13 }
 0x65b   :  { %v2426_v54 = vpop.eup %2425  ;;  %v1041_v17 = vsub.f32 1.0, %v1040_v1 }
 0x65c   :  { %v2428_v23 = vpop.eup %2427  ;;  %v1066_v57 = vmul.f32 %v2426_v54, %v3074_v37  ;;  %v1049_v37 = vmul.f32 0.015625, %v3086_v5 }
 0x65d   :  { %v1004_v34 = vmul.f32 %v2428_v23, %v3042_v27  ;;  %v1426_v63 = vpop.xlane.xlu1 %1425  ;;  %v1042_v10 = vadd.f32 %v1041_v17, %v1013_v8  ;;  %v1920_v17 = vsel %vm1765_vm2, 1.0, %v2468_v13 }
 0x65e   :  { %v2430_v58 = vpop.eup %2429  ;;  %v1067_v12 = vsub.f32 1.0, %v1066_v57  ;;  %v1427_v61 = vmul.f32 0.03125, %v1426_v63 }
 0x65f   :  { %v2432_v41 = vpop.eup %2431  ;;  %v1091_v62 = vmul.f32 %v2430_v58, %v3062_v16  ;;  %v1005_v2 = vsub.f32 1.0, %v1004_v34 }
 0x660   :  { %v1355_v15 = vmul.f32 %v2432_v41, %v1331_v33  ;;  %v2434_v24 = vpop.eup %2433  ;;  %v1068_v3 = vadd.f32 %v1067_v12, %v1049_v37 }
 0x661   :  { %v2436_v59 = vpop.eup %2435  ;;  %v1006_v27 = vadd.f32 %v1005_v2, %v977_v60  ;;  %v1092_v20 = vsub.f32 1.0, %v1091_v62  ;;  %v1690_v31 = vmul.f32 0.6931472, %v2434_v24  ;;  %v1727_v36 = vpop.xlane.xlu1 %1726  ;;  %v1921_v60 = vsel %vm1770_vm3, 1.0, %v2468_v13 }
 0x662   :  { %v2438_v28 = vpop.eup %2437  ;;  %v1356_v30 = vsub.f32 1.0, %v1355_v15  ;;  %v1392_v44 = vmul.f32 %v2436_v59, %v1368_v4  ;;  %v1728_v48 = vmul.f32 4.0, %v1727_v36  ;;  %v1793_v24 = vsel %vm50_vm4, 1.0, %v2468_v13 }
 0x663   :  { %v2440_v19 = vpop.eup %2439  ;;  %v1043_v16 = vadd.f32 %v1042_v10, %v1006_v27  ;;  %v1418_v33 = vmul.f32 %v2438_v28, %v1404_v18  ;;  %v1093_v39 = vadd.f32 %v1092_v20, %v1074_v32  ;;  %v1691_v5 = vadd.f32 %v1690_v31, %v2984_v29 }
 0x664   :  { %v1444_v35 = vmul.f32 %v2440_v19, %v1430_v7  ;;  %v1357_v40 = vadd.f32 %v1356_v30, %v1328_v0  ;;  %v1393_v45 = vsub.f32 1.0, %v1392_v44  ;;  %v1729_v26 = vmul.f32 0.6, %v1728_v48 }
 0x665   :  { %v1094_v46 = vadd.f32 %v1093_v39, %v1068_v3  ;;  %v1419_v21 = vsub.f32 1.0, %v1418_v33  ;;  %v1918_v29 = vsel %vm1755_vm0, 1.0, %v2468_v13 }
 0x666   :  { %v1358_v47 = vadd.f32 %v1357_v40, %v1043_v16  ;;  %v1445_v49 = vsub.f32 1.0, %v1444_v35  ;;  %v1394_v50 = vadd.f32 %v1393_v45, %v1365_v38  ;;  %v1758_v54 = vmul.f32 %v1918_v29, %v1729_v26 }
 0x667   :  { %v1420_v6 = vadd.f32 %v1419_v21, %v1401_v42 }
 0x668   :  { %v1446_v11 = vadd.f32 %v1445_v49, %v1427_v61  ;;  %v1395_v18 = vadd.f32 %v1394_v50, %v1358_v47 }
 0x669   :  { %v1421_v9 = vadd.f32 %v1420_v6, %v1094_v46 }
 0x66a   :  { %v1749_v53 = vmul.f32 0.5, %v1395_v18 }
 0x66b   :  { %v1447_v1 = vadd.f32 %v1446_v11, %v1421_v9 }
 0x66c   :  { %v1763_v56 = vmul.f32 %v1919_v55, %v1749_v53 }
 0x66d   :  { %v1750_v34 = vmul.f32 0.5, %v1447_v1 }
 0x66f   :  { %v1768_v8 = vmul.f32 %v1920_v17, %v1750_v34 }
 0x69a   :  { %v1694_v51 = vpop.xlane.xlu0 %1693 }
 0x69b   :  { %v1695_v14 = vsub.f32 %v1691_v5, %v1694_v51 }
 0x69d   :  { %v1696_v52 = vmul.f32 0.4, %v1695_v14 }
 0x69f   :  { %v1754_v4 = vmul.f32 %v1917_v43, %v1696_v52 }
 0x6a1   :  { %v1759_v23 = vadd.f32 %v1758_v54, %v1754_v4 }
 0x6a3   :  { %v1764_v58 = vadd.f32 %v1763_v56, %v1759_v23 }
 0x6a5   :  { %v1769_v15 = vadd.f32 %v1768_v8, %v1764_v58 }
 0x6a6   :  { %v1746_v57 = vpop.xlane.xlu0 %1745 }
 0x6a7   :  { %v1747_v41 = vmul.f32 4.0, %v1746_v57 }
 0x6a9   :  { %v1748_v62 = vmul.f32 2.0, %v1747_v41 }
 0x6ab   :  { %v1773_v63 = vmul.f32 %v1921_v60, %v1748_v62 }
 0x6ad   :  { %v1774_v2 = vadd.f32 %v1773_v63, %v1769_v15 }
 0x6af   :  { %v1775_v10 = vmul.f32 %v1793_v24, %v1774_v2 }
 0x6b1   :  { %v1776_v12 = vrot.slane %v1775_v10, 4 }
 0x6b3   :  { %v1777_v59 = vadd.f32 %v1776_v12, %v1775_v10 }
 0x6b5   :  { %v1778_v25 = vrot.slane %v1777_v59, 2 }
 0x6b7   :  { %v1779_v27 = vadd.f32 %v1778_v25, %v1777_v59 }
 0x6b9   :  { %v1780_v7 = vrot.slane %v1779_v27, 1 }
 0x6bb   :  { %v1781_v20 = vadd.f32 %v1780_v7, %v1779_v27 }
 0x6bd   :  { %1783 = vst [vmem:[%s3143_s8] sm:$0xff] %v1781_v20 }
 0x6be   :  { %1792 = vsyncpa [#allocation3], 1 }

</bundles_post_ra>
